<compile_context>
chip_gen: v6e
topology: v6e:2x2x1
jax: 0.10.0
libtpu: 0.0.40
codegen_flags: <defaults>
</compile_context>

<pallas_src>
import math
from functools import partial

import jax
import jax.numpy as jnp
from jax.experimental import pallas as pl
from jax.experimental.pallas import tpu as pltpu


def _layer_norm(x, w, b, eps=1e-5):
    mu = jnp.mean(x, axis=-1, keepdims=True)
    var = jnp.mean((x - mu) ** 2, axis=-1, keepdims=True)
    return (x - mu) * jax.lax.rsqrt(var + eps) * w + b


# packed-vector row indices inside `vecs` (8, D)
_BO, _B2, _LN1W, _LN1B, _LN2W, _LN2B = 0, 1, 2, 3, 4, 5


def fused_transformer_kernel(x_ref, wqkv_ref, wo_ref, w1_ref, w2_ref,
                             bqkv_ref, vecs_ref, b1_ref, fcw_ref, fcb_ref,
                             o_ref, x_vmem, *, nhead):
    l = pl.program_id(0)
    n_layers = pl.num_programs(0)

    # Load the input sequence into the resident VMEM activation once.
    @pl.when(l == 0)
    def _():
        x_vmem[...] = x_ref[...]                       # (S, D) f32

    x = x_vmem[...]                                    # (S, D) f32
    S, D = x.shape
    hd = D // nhead
    xb = x.astype(jnp.bfloat16)
    # NOTE: S=8 gives half-filled bf16 vregs (bf16 min tile is (16,128)); fine at
    # toy sizes, pad/mask S to a multiple of 16 for production shapes.

    # ---- fused in_proj: one lane/MXU-dense matmul (scale folded into wq/bq) ----
    qkv = jnp.dot(xb, wqkv_ref[...],
                  preferred_element_type=jnp.float32) + bqkv_ref[...]   # (S, 3D) f32

    def heads(off):                                    # static lane slices -> (H, S, hd)
        return jnp.stack([qkv[:, off + h * hd: off + (h + 1) * hd]
                          for h in range(nhead)], axis=0)

    q = heads(0).astype(jnp.bfloat16)                  # (H, S, hd), scale already applied
    k = heads(D).astype(jnp.bfloat16)
    v = heads(2 * D).astype(jnp.bfloat16)

    # ---- attention (head-batched matmuls; dense softmax, fine for small S) ----
    s = jnp.einsum('hqf,hkf->hqk', q, k,
                   preferred_element_type=jnp.float32)                  # (H, S, S)
    s = s - jnp.max(s, axis=-1, keepdims=True)
    p = jnp.exp(s)
    p = p * pl.reciprocal(jnp.sum(p, axis=-1, keepdims=True), approx=True)

    oh = jnp.einsum('hqk,hkf->hqf', p.astype(jnp.bfloat16), v,
                    preferred_element_type=jnp.float32)                 # (H, S, hd)
    o_cat = jnp.concatenate([oh[h] for h in range(nhead)], axis=-1)     # (S, D) f32

    # ---- out-proj: single dense (S,D) @ (D,D) matmul ----
    attn = jnp.dot(o_cat.astype(jnp.bfloat16), wo_ref[...],
                   preferred_element_type=jnp.float32) + vecs_ref[_BO:_BO + 1, :]

    x = _layer_norm(x + attn, vecs_ref[_LN1W:_LN1W + 1, :], vecs_ref[_LN1B:_LN1B + 1, :])

    # ---- feed-forward (pre-transposed weights, bf16 MXU operands) ----
    h1 = jnp.dot(x.astype(jnp.bfloat16), w1_ref[...],
                 preferred_element_type=jnp.float32) + b1_ref[...]      # (S, FF)
    h1 = jnp.maximum(h1, 0.0)
    ff = jnp.dot(h1.astype(jnp.bfloat16), w2_ref[...],
                 preferred_element_type=jnp.float32) + vecs_ref[_B2:_B2 + 1, :]

    x = _layer_norm(x + ff, vecs_ref[_LN2W:_LN2W + 1, :], vecs_ref[_LN2B:_LN2B + 1, :])
    x_vmem[...] = x

    # ---- epilogue: fold the final Linear into the last layer step (lane-dense store) ----
    @pl.when(l == n_layers - 1)
    def _():
        o_ref[...] = (jnp.dot(x.astype(jnp.bfloat16), fcw_ref[...],
                              preferred_element_type=jnp.float32)
                      + fcb_ref[...]).astype(o_ref.dtype)


def custom_transformer_forward(x_sbd, params, *, nhead, out_dim):
    """x_sbd: (S, B, D) f32 (PyTorch batch_first=False). Returns (S, out_dim)."""
    # out[:, -1, :] selects the LAST BATCH element -> only x[:, -1, :] contributes.
    x_last = x_sbd[:, -1, :]                           # (S, D)
    S, D = x_last.shape
    L = params["wqkv"].shape[0]
    OP = params["fcw"].shape[1]                        # lane-padded output dim (>=128)

    def wspec(arr):
        nrest = arr.ndim - 1
        return pl.BlockSpec((None,) + tuple(arr.shape[1:]),
                            lambda l, _n=nrest: (l,) + (0,) * _n)

    in_specs = [
        pl.BlockSpec((S, D), lambda l: (0, 0)),        # x (block index constant)
        wspec(params["wqkv"]), wspec(params["wo"]),
        wspec(params["w1"]), wspec(params["w2"]),
        wspec(params["bqkv"]), wspec(params["vecs"]), wspec(params["b1"]),
        pl.BlockSpec(tuple(params["fcw"].shape), lambda l: (0, 0)),
        pl.BlockSpec(tuple(params["fcb"].shape), lambda l: (0, 0)),
    ]
    out_specs = pl.BlockSpec((S, OP), lambda l: (0, 0))

    # explicit VMEM budget: double-buffered per-layer slabs + constants + activations
    per_layer = sum(math.prod(params[k].shape[1:]) * params[k].dtype.itemsize
                    for k in ("wqkv", "wo", "w1", "w2", "bqkv", "vecs", "b1"))
    FF = params["w1"].shape[-1]
    const = (math.prod(params["fcw"].shape) * params["fcw"].dtype.itemsize
             + math.prod(params["fcb"].shape) * 4 + S * D * 4 + S * OP * 4)
    est = 2 * per_layer + 2 * const + 2 * S * D * 4 + 4 * S * FF * 4
    vmem_limit = int(min(max(est + (8 << 20), 32 << 20), 56 << 20))

    out = pl.pallas_call(
        partial(fused_transformer_kernel, nhead=nhead),
        out_shape=jax.ShapeDtypeStruct((S, OP), jnp.float32),
        grid=(L,),
        in_specs=in_specs,
        out_specs=out_specs,
        scratch_shapes=[pltpu.VMEM((S, D), jnp.float32)],
        compiler_params=pltpu.CompilerParams(
            dimension_semantics=("arbitrary",),
            vmem_limit_bytes=vmem_limit),
    )(x_last, params["wqkv"], params["wo"], params["w1"], params["w2"],
      params["bqkv"], params["vecs"], params["b1"], params["fcw"], params["fcb"])

    return out[:, :out_dim]                            # (S, out_dim)


def init_params(key, D, FF, num_layers, out_dim):
    """PyTorch-layout parameters (same layout as nn.TransformerEncoderLayer)."""
    layers = []
    for i in range(num_layers):
        ks = jax.random.split(jax.random.fold_in(key, i), 8)
        layers.append(dict(
            wqkv=0.02 * jax.random.normal(ks[0], (3 * D, D), jnp.float32),
            bqkv=0.02 * jax.random.normal(ks[1], (1, 3 * D), jnp.float32),
            wo=0.02 * jax.random.normal(ks[2], (D, D), jnp.float32),
            bo=0.02 * jax.random.normal(ks[3], (1, D), jnp.float32),
            ln1w=jnp.ones((1, D), jnp.float32),
            ln1b=jnp.zeros((1, D), jnp.float32),
            w1=0.02 * jax.random.normal(ks[4], (FF, D), jnp.float32),
            b1=0.02 * jax.random.normal(ks[5], (1, FF), jnp.float32),
            w2=0.02 * jax.random.normal(ks[6], (D, FF), jnp.float32),
            b2=0.02 * jax.random.normal(ks[7], (1, D), jnp.float32),
            ln2w=jnp.ones((1, D), jnp.float32),
            ln2b=jnp.zeros((1, D), jnp.float32),
        ))
    kf = jax.random.fold_in(key, 1000)
    fc_w = 0.02 * jax.random.normal(kf, (out_dim, D), jnp.float32)
    fc_b = jnp.zeros((1, out_dim), jnp.float32)
    return layers, fc_w, fc_b


def prepare_params(layer_params, fc_w, fc_b, nhead):
    """PyTorch-layout params -> kernel layout: pre-transposed bf16 matmul weights,
       fused (D,3D) in_proj with the 1/sqrt(hd) scale folded in, packed small
       vectors, everything stacked over layers, fc output lane-padded to 128."""
    D = layer_params[0]["wo"].shape[0]
    FF = layer_params[0]["w1"].shape[0]
    hd = D // nhead
    scale = 1.0 / math.sqrt(hd)
    O = fc_w.shape[0]
    OP = max(128, ((O + 127) // 128) * 128)

    wqkv_l, wo_l, w1_l, w2_l, bqkv_l, vecs_l, b1_l = [], [], [], [], [], [], []
    for p in layer_params:
        wqkv_t = p["wqkv"].T                           # (D, 3D): x @ wqkv_t == in_proj
        bqkv = p["bqkv"].reshape(1, 3 * D)
        wqkv_t = wqkv_t.at[:, :D].multiply(scale)      # fold attention scale into q
        bqkv = bqkv.at[:, :D].multiply(scale)
        wqkv_l.append(wqkv_t.astype(jnp.bfloat16))
        bqkv_l.append(bqkv)
        wo_l.append(p["wo"].T.astype(jnp.bfloat16))    # (D, D)
        w1_l.append(p["w1"].T.astype(jnp.bfloat16))    # (D, FF)
        w2_l.append(p["w2"].T.astype(jnp.bfloat16))    # (FF, D)
        b1_l.append(p["b1"].reshape(1, FF))
        vecs = jnp.zeros((8, D), jnp.float32)
        vecs = vecs.at[_BO].set(p["bo"].reshape(-1))
        vecs = vecs.at[_B2].set(p["b2"].reshape(-1))
        vecs = vecs.at[_LN1W].set(p["ln1w"].reshape(-1))
        vecs = vecs.at[_LN1B].set(p["ln1b"].reshape(-1))
        vecs = vecs.at[_LN2W].set(p["ln2w"].reshape(-1))
        vecs = vecs.at[_LN2B].set(p["ln2b"].reshape(-1))
        vecs_l.append(vecs)

    fcw = jnp.zeros((D, OP), jnp.float32).at[:, :O].set(fc_w.T).astype(jnp.bfloat16)
    fcb = jnp.zeros((1, OP), jnp.float32).at[:, :O].set(fc_b.reshape(1, O))

    return dict(
        wqkv=jnp.stack(wqkv_l), wo=jnp.stack(wo_l),
        w1=jnp.stack(w1_l), w2=jnp.stack(w2_l),
        bqkv=jnp.stack(bqkv_l), vecs=jnp.stack(vecs_l), b1=jnp.stack(b1_l),
        fcw=fcw, fcb=fcb,
    )


if __name__ == "__main__":
    # Small, forward-consistent sizes. x is (S, B, D): batch_first=False.
    S, B = 8, 2
    D = 32                 # input_dim (divisible by nhead)
    NHEAD = 4
    NUM_LAYERS = 2
    OUT_DIM = 16           # output_dim
    FF = 2048              # PyTorch TransformerEncoderLayer default dim_feedforward

    key = jax.random.PRNGKey(0)
    kx, kp = jax.random.split(key)
    x = jax.random.normal(kx, (S, B, D), jnp.float32)

    layer_params, fc_w, fc_b = init_params(kp, D, FF, NUM_LAYERS, OUT_DIM)
    params = prepare_params(layer_params, fc_w, fc_b, NHEAD)

    fwd = jax.jit(partial(custom_transformer_forward, nhead=NHEAD, out_dim=OUT_DIM))
    y = fwd(x, params)
    y = jax.block_until_ready(y)
    assert y.shape == (S, OUT_DIM), y.shape
    assert bool(jnp.isfinite(y).all())
    print("KERNEL_OK")
</pallas_src>

<mosaic_0001>
module attributes {stable_mosaic.version = 11 : i64} {
  func.func @fused_transformer_kernel(%arg0: i32, %arg1: memref<8x32xf32, #tpu.memory_space<vmem>>, %arg2: memref<1x32x96xbf16, #tpu.memory_space<vmem>>, %arg3: memref<1x32x32xbf16, #tpu.memory_space<vmem>>, %arg4: memref<1x32x2048xbf16, #tpu.memory_space<vmem>>, %arg5: memref<1x2048x32xbf16, #tpu.memory_space<vmem>>, %arg6: memref<1x1x96xf32, #tpu.memory_space<vmem>>, %arg7: memref<1x8x32xf32, #tpu.memory_space<vmem>>, %arg8: memref<1x1x2048xf32, #tpu.memory_space<vmem>>, %arg9: memref<32x128xbf16, #tpu.memory_space<vmem>>, %arg10: memref<1x128xf32, #tpu.memory_space<vmem>>, %arg11: memref<8x128xf32, #tpu.memory_space<vmem>>, %arg12: memref<8x32xf32, #tpu.memory_space<vmem>>) attributes {dimension_semantics = [#tpu.dimension_semantics<arbitrary>], iteration_bounds = array<i64: 2>, scalar_prefetch = 0 : i64, scratch_operands = 1 : i64, tpu.core_type = #tpu.core_type<tc>, window_params = [{pipeline_mode = #tpu.pipeline_mode<synchronous>, transform_indices = @transform_0, window_bounds = array<i64: 8, 32>}, {transform_indices = @transform_1, window_bounds = array<i64: 1, 32, 96>}, {transform_indices = @transform_2, window_bounds = array<i64: 1, 32, 32>}, {transform_indices = @transform_3, window_bounds = array<i64: 1, 32, 2048>}, {transform_indices = @transform_4, window_bounds = array<i64: 1, 2048, 32>}, {transform_indices = @transform_5, window_bounds = array<i64: 1, 1, 96>}, {transform_indices = @transform_6, window_bounds = array<i64: 1, 8, 32>}, {transform_indices = @transform_7, window_bounds = array<i64: 1, 1, 2048>}, {pipeline_mode = #tpu.pipeline_mode<synchronous>, transform_indices = @transform_8, window_bounds = array<i64: 32, 128>}, {pipeline_mode = #tpu.pipeline_mode<synchronous>, transform_indices = @transform_9, window_bounds = array<i64: 1, 128>}, {pipeline_mode = #tpu.pipeline_mode<synchronous>, transform_indices = @transform_10, window_bounds = array<i64: 8, 128>}]} {
    %c0_i32 = arith.constant 0 : i32
    %0 = arith.cmpi eq, %arg0, %c0_i32 : i32
    %1 = arith.extui %0 : i1 to i32
    %c0_i32_0 = arith.constant 0 : i32
    %2 = arith.cmpi ne, %1, %c0_i32_0 : i32
    scf.if %2 {
      %c0_54 = arith.constant 0 : index
      %c0_55 = arith.constant 0 : index
      %148 = vector.load %arg1[%c0_54, %c0_55] : memref<8x32xf32, #tpu.memory_space<vmem>>, vector<8x32xf32>
      %c0_56 = arith.constant 0 : index
      %c0_57 = arith.constant 0 : index
      %149 = vector.load %arg12[%c0_56, %c0_57] : memref<8x32xf32, #tpu.memory_space<vmem>>, vector<8x32xf32>
      tpu.vector_store %arg12[%c0_56, %c0_57], %148 {strides = array<i32>} : memref<8x32xf32, #tpu.memory_space<vmem>>, vector<8x32xf32>,
    } else {
    }
    %c0 = arith.constant 0 : index
    %c0_1 = arith.constant 0 : index
    %3 = vector.load %arg12[%c0, %c0_1] : memref<8x32xf32, #tpu.memory_space<vmem>>, vector<8x32xf32>
    %4 = arith.truncf %3 : vector<8x32xf32> to vector<8x32xbf16>
    %c0_2 = arith.constant 0 : index
    %c0_3 = arith.constant 0 : index
    %c0_4 = arith.constant 0 : index
    %5 = vector.load %arg2[%c0_2, %c0_3, %c0_4] : memref<1x32x96xbf16, #tpu.memory_space<vmem>>, vector<1x32x96xbf16>
    %6 = vector.shape_cast %5 : vector<1x32x96xbf16> to vector<32x96xbf16>
    %cst = arith.constant dense<0.000000e+00> : vector<8x96xf32>
    %7 = tpu.matmul %4, %6, %cst {dimension_numbers = #tpu.dot_dimension_numbers<[1], [0], [0], [1], [0, 0, 1, 1], [], []>} : vector<8x32xbf16>, vector<32x96xbf16>, vector<8x96xf32> -> vector<8x96xf32>
    %c0_5 = arith.constant 0 : index
    %c0_6 = arith.constant 0 : index
    %c0_7 = arith.constant 0 : index
    %8 = vector.load %arg6[%c0_5, %c0_6, %c0_7] : memref<1x1x96xf32, #tpu.memory_space<vmem>>, vector<1x1x96xf32>
    %9 = vector.shape_cast %8 : vector<1x1x96xf32> to vector<1x96xf32>
    %10 = vector.broadcast %9 : vector<1x96xf32> to vector<8x96xf32>
    %11 = arith.addf %7, %10 : vector<8x96xf32>
    %12 = vector.extract_strided_slice %11 {offsets = [0, 0], sizes = [8, 8], strides = [1, 1]} : vector<8x96xf32> to vector<8x8xf32>
    %13 = vector.extract_strided_slice %11 {offsets = [0, 8], sizes = [8, 8], strides = [1, 1]} : vector<8x96xf32> to vector<8x8xf32>
    %14 = vector.extract_strided_slice %11 {offsets = [0, 16], sizes = [8, 8], strides = [1, 1]} : vector<8x96xf32> to vector<8x8xf32>
    %15 = vector.extract_strided_slice %11 {offsets = [0, 24], sizes = [8, 8], strides = [1, 1]} : vector<8x96xf32> to vector<8x8xf32>
    %16 = vector.shape_cast %12 : vector<8x8xf32> to vector<1x8x8xf32>
    %17 = vector.shape_cast %13 : vector<8x8xf32> to vector<1x8x8xf32>
    %18 = vector.shape_cast %14 : vector<8x8xf32> to vector<1x8x8xf32>
    %19 = vector.shape_cast %15 : vector<8x8xf32> to vector<1x8x8xf32>
    %20 = tpu.concatenate %16, %17, %18, %19 in 0 : vector<1x8x8xf32>, vector<1x8x8xf32>, vector<1x8x8xf32>, vector<1x8x8xf32> -> vector<4x8x8xf32>
    %21 = arith.truncf %20 : vector<4x8x8xf32> to vector<4x8x8xbf16>
    %22 = vector.extract_strided_slice %11 {offsets = [0, 32], sizes = [8, 8], strides = [1, 1]} : vector<8x96xf32> to vector<8x8xf32>
    %23 = vector.extract_strided_slice %11 {offsets = [0, 40], sizes = [8, 8], strides = [1, 1]} : vector<8x96xf32> to vector<8x8xf32>
    %24 = vector.extract_strided_slice %11 {offsets = [0, 48], sizes = [8, 8], strides = [1, 1]} : vector<8x96xf32> to vector<8x8xf32>
    %25 = vector.extract_strided_slice %11 {offsets = [0, 56], sizes = [8, 8], strides = [1, 1]} : vector<8x96xf32> to vector<8x8xf32>
    %26 = vector.shape_cast %22 : vector<8x8xf32> to vector<1x8x8xf32>
    %27 = vector.shape_cast %23 : vector<8x8xf32> to vector<1x8x8xf32>
    %28 = vector.shape_cast %24 : vector<8x8xf32> to vector<1x8x8xf32>
    %29 = vector.shape_cast %25 : vector<8x8xf32> to vector<1x8x8xf32>
    %30 = tpu.concatenate %26, %27, %28, %29 in 0 : vector<1x8x8xf32>, vector<1x8x8xf32>, vector<1x8x8xf32>, vector<1x8x8xf32> -> vector<4x8x8xf32>
    %31 = arith.truncf %30 : vector<4x8x8xf32> to vector<4x8x8xbf16>
    %32 = vector.extract_strided_slice %11 {offsets = [0, 64], sizes = [8, 8], strides = [1, 1]} : vector<8x96xf32> to vector<8x8xf32>
    %33 = vector.extract_strided_slice %11 {offsets = [0, 72], sizes = [8, 8], strides = [1, 1]} : vector<8x96xf32> to vector<8x8xf32>
    %34 = vector.extract_strided_slice %11 {offsets = [0, 80], sizes = [8, 8], strides = [1, 1]} : vector<8x96xf32> to vector<8x8xf32>
    %35 = vector.extract_strided_slice %11 {offsets = [0, 88], sizes = [8, 8], strides = [1, 1]} : vector<8x96xf32> to vector<8x8xf32>
    %36 = vector.shape_cast %32 : vector<8x8xf32> to vector<1x8x8xf32>
    %37 = vector.shape_cast %33 : vector<8x8xf32> to vector<1x8x8xf32>
    %38 = vector.shape_cast %34 : vector<8x8xf32> to vector<1x8x8xf32>
    %39 = vector.shape_cast %35 : vector<8x8xf32> to vector<1x8x8xf32>
    %40 = tpu.concatenate %36, %37, %38, %39 in 0 : vector<1x8x8xf32>, vector<1x8x8xf32>, vector<1x8x8xf32>, vector<1x8x8xf32> -> vector<4x8x8xf32>
    %41 = arith.truncf %40 : vector<4x8x8xf32> to vector<4x8x8xbf16>
    "tpu.trace_start"() <{level = 10 : i32, message = "hqf,hkf->hqk"}> : () -> ()
    %cst_8 = arith.constant dense<0.000000e+00> : vector<4x8x8xf32>
    %42 = tpu.matmul %21, %31, %cst_8 {dimension_numbers = #tpu.dot_dimension_numbers<[2], [2], [1], [1], [0, 0, 0, 1, 1, 1], [0], [0]>} : vector<4x8x8xbf16>, vector<4x8x8xbf16>, vector<4x8x8xf32> -> vector<4x8x8xf32>
    "tpu.trace_stop"() : () -> ()
    %cst_9 = arith.constant dense<0xFF800000> : vector<4x8xf32>
    %43 = vector.multi_reduction <maximumf>, %42, %cst_9 [2] : vector<4x8x8xf32> to vector<4x8xf32>
    %44 = vector.shape_cast %43 : vector<4x8xf32> to vector<4x8x1xf32>
    %45 = vector.broadcast %44 : vector<4x8x1xf32> to vector<4x8x8xf32>
    %46 = arith.subf %42, %45 : vector<4x8x8xf32>
    %47 = math.exp %46 : vector<4x8x8xf32>
    %cst_10 = arith.constant dense<0.000000e+00> : vector<4x8xf32>
    %48 = vector.multi_reduction <add>, %47, %cst_10 [2] : vector<4x8x8xf32> to vector<4x8xf32>
    %49 = vector.shape_cast %48 : vector<4x8xf32> to vector<4x8x1xf32>
    %50 = tpu.reciprocal %49 {approx = true} : vector<4x8x1xf32> -> vector<4x8x1xf32>
    %51 = vector.broadcast %50 : vector<4x8x1xf32> to vector<4x8x8xf32>
    %52 = arith.mulf %47, %51 : vector<4x8x8xf32>
    %53 = arith.truncf %52 : vector<4x8x8xf32> to vector<4x8x8xbf16>
    "tpu.trace_start"() <{level = 10 : i32, message = "hqk,hkf->hqf"}> : () -> ()
    %cst_11 = arith.constant dense<0.000000e+00> : vector<4x8x8xf32>
    %54 = tpu.matmul %53, %41, %cst_11 {dimension_numbers = #tpu.dot_dimension_numbers<[2], [1], [1], [2], [0, 0, 0, 1, 1, 2], [0], [0]>} : vector<4x8x8xbf16>, vector<4x8x8xbf16>, vector<4x8x8xf32> -> vector<4x8x8xf32>
    "tpu.trace_stop"() : () -> ()
    %55 = vector.extract_strided_slice %54 {offsets = [0, 0, 0], sizes = [1, 8, 8], strides = [1, 1, 1]} : vector<4x8x8xf32> to vector<1x8x8xf32>
    %56 = vector.shape_cast %55 : vector<1x8x8xf32> to vector<8x8xf32>
    %57 = vector.extract_strided_slice %54 {offsets = [1, 0, 0], sizes = [1, 8, 8], strides = [1, 1, 1]} : vector<4x8x8xf32> to vector<1x8x8xf32>
    %58 = vector.shape_cast %57 : vector<1x8x8xf32> to vector<8x8xf32>
    %59 = vector.extract_strided_slice %54 {offsets = [2, 0, 0], sizes = [1, 8, 8], strides = [1, 1, 1]} : vector<4x8x8xf32> to vector<1x8x8xf32>
    %60 = vector.shape_cast %59 : vector<1x8x8xf32> to vector<8x8xf32>
    %61 = vector.extract_strided_slice %54 {offsets = [3, 0, 0], sizes = [1, 8, 8], strides = [1, 1, 1]} : vector<4x8x8xf32> to vector<1x8x8xf32>
    %62 = vector.shape_cast %61 : vector<1x8x8xf32> to vector<8x8xf32>
    %63 = tpu.concatenate %56, %58, %60, %62 in 1 : vector<8x8xf32>, vector<8x8xf32>, vector<8x8xf32>, vector<8x8xf32> -> vector<8x32xf32>
    %64 = arith.truncf %63 : vector<8x32xf32> to vector<8x32xbf16>
    %c0_12 = arith.constant 0 : index
    %c0_13 = arith.constant 0 : index
    %c0_14 = arith.constant 0 : index
    %65 = vector.load %arg3[%c0_12, %c0_13, %c0_14] : memref<1x32x32xbf16, #tpu.memory_space<vmem>>, vector<1x32x32xbf16>
    %66 = vector.shape_cast %65 : vector<1x32x32xbf16> to vector<32x32xbf16>
    %cst_15 = arith.constant dense<0.000000e+00> : vector<8x32xf32>
    %67 = tpu.matmul %64, %66, %cst_15 {dimension_numbers = #tpu.dot_dimension_numbers<[1], [0], [0], [1], [0, 0, 1, 1], [], []>} : vector<8x32xbf16>, vector<32x32xbf16>, vector<8x32xf32> -> vector<8x32xf32>
    %c0_16 = arith.constant 0 : index
    %c0_17 = arith.constant 0 : index
    %c0_18 = arith.constant 0 : index
    %68 = vector.load %arg7[%c0_16, %c0_17, %c0_18] : memref<1x8x32xf32, #tpu.memory_space<vmem>>, vector<1x1x32xf32>
    %69 = vector.shape_cast %68 : vector<1x1x32xf32> to vector<1x32xf32>
    %70 = vector.broadcast %69 : vector<1x32xf32> to vector<8x32xf32>
    %71 = arith.addf %67, %70 : vector<8x32xf32>
    %72 = arith.addf %3, %71 : vector<8x32xf32>
    %c0_19 = arith.constant 0 : index
    %c2 = arith.constant 2 : index
    %c0_20 = arith.constant 0 : index
    %73 = vector.load %arg7[%c0_19, %c2, %c0_20] : memref<1x8x32xf32, #tpu.memory_space<vmem>>, vector<1x1x32xf32>
    %74 = vector.shape_cast %73 : vector<1x1x32xf32> to vector<1x32xf32>
    %c0_21 = arith.constant 0 : index
    %c3 = arith.constant 3 : index
    %c0_22 = arith.constant 0 : index
    %75 = vector.load %arg7[%c0_21, %c3, %c0_22] : memref<1x8x32xf32, #tpu.memory_space<vmem>>, vector<1x1x32xf32>
    %76 = vector.shape_cast %75 : vector<1x1x32xf32> to vector<1x32xf32>
    %cst_23 = arith.constant dense<0.000000e+00> : vector<8xf32>
    %77 = vector.multi_reduction <add>, %72, %cst_23 [1] : vector<8x32xf32> to vector<8xf32>
    %78 = vector.shape_cast %77 : vector<8xf32> to vector<8x1xf32>
    %cst_24 = arith.constant 3.200000e+01 : f32
    %79 = vector.broadcast %cst_24 : f32 to vector<8x1xf32>
    %80 = arith.divf %78, %79 : vector<8x1xf32>
    %81 = vector.broadcast %80 : vector<8x1xf32> to vector<8x32xf32>
    %82 = arith.subf %72, %81 : vector<8x32xf32>
    %83 = arith.mulf %82, %82 : vector<8x32xf32>
    %cst_25 = arith.constant dense<0.000000e+00> : vector<8xf32>
    %84 = vector.multi_reduction <add>, %83, %cst_25 [1] : vector<8x32xf32> to vector<8xf32>
    %85 = vector.shape_cast %84 : vector<8xf32> to vector<8x1xf32>
    %cst_26 = arith.constant 3.200000e+01 : f32
    %86 = vector.broadcast %cst_26 : f32 to vector<8x1xf32>
    %87 = arith.divf %85, %86 : vector<8x1xf32>
    %88 = vector.broadcast %80 : vector<8x1xf32> to vector<8x32xf32>
    %89 = arith.subf %72, %88 : vector<8x32xf32>
    %cst_27 = arith.constant 9.99999974E-6 : f32
    %90 = vector.broadcast %cst_27 : f32 to vector<8x1xf32>
    %91 = arith.addf %87, %90 : vector<8x1xf32>
    %92 = math.rsqrt %91 : vector<8x1xf32>
    %93 = vector.broadcast %92 : vector<8x1xf32> to vector<8x32xf32>
    %94 = arith.mulf %89, %93 : vector<8x32xf32>
    %95 = vector.broadcast %74 : vector<1x32xf32> to vector<8x32xf32>
    %96 = arith.mulf %94, %95 : vector<8x32xf32>
    %97 = vector.broadcast %76 : vector<1x32xf32> to vector<8x32xf32>
    %98 = arith.addf %96, %97 : vector<8x32xf32>
    %99 = arith.truncf %98 : vector<8x32xf32> to vector<8x32xbf16>
    %c0_28 = arith.constant 0 : index
    %c0_29 = arith.constant 0 : index
    %c0_30 = arith.constant 0 : index
    %100 = vector.load %arg4[%c0_28, %c0_29, %c0_30] : memref<1x32x2048xbf16, #tpu.memory_space<vmem>>, vector<1x32x2048xbf16>
    %101 = vector.shape_cast %100 : vector<1x32x2048xbf16> to vector<32x2048xbf16>
    %cst_31 = arith.constant dense<0.000000e+00> : vector<8x2048xf32>
    %102 = tpu.matmul %99, %101, %cst_31 {dimension_numbers = #tpu.dot_dimension_numbers<[1], [0], [0], [1], [0, 0, 1, 1], [], []>} : vector<8x32xbf16>, vector<32x2048xbf16>, vector<8x2048xf32> -> vector<8x2048xf32>
    %c0_32 = arith.constant 0 : index
    %c0_33 = arith.constant 0 : index
    %c0_34 = arith.constant 0 : index
    %103 = vector.load %arg8[%c0_32, %c0_33, %c0_34] : memref<1x1x2048xf32, #tpu.memory_space<vmem>>, vector<1x1x2048xf32>
    %104 = vector.shape_cast %103 : vector<1x1x2048xf32> to vector<1x2048xf32>
    %105 = vector.broadcast %104 : vector<1x2048xf32> to vector<8x2048xf32>
    %106 = arith.addf %102, %105 : vector<8x2048xf32>
    %cst_35 = arith.constant 0.000000e+00 : f32
    %107 = vector.broadcast %cst_35 : f32 to vector<8x2048xf32>
    %108 = arith.maximumf %106, %107 : vector<8x2048xf32>
    %109 = arith.truncf %108 : vector<8x2048xf32> to vector<8x2048xbf16>
    %c0_36 = arith.constant 0 : index
    %c0_37 = arith.constant 0 : index
    %c0_38 = arith.constant 0 : index
    %110 = vector.load %arg5[%c0_36, %c0_37, %c0_38] : memref<1x2048x32xbf16, #tpu.memory_space<vmem>>, vector<1x2048x32xbf16>
    %111 = vector.shape_cast %110 : vector<1x2048x32xbf16> to vector<2048x32xbf16>
    %cst_39 = arith.constant dense<0.000000e+00> : vector<8x32xf32>
    %112 = tpu.matmul %109, %111, %cst_39 {dimension_numbers = #tpu.dot_dimension_numbers<[1], [0], [0], [1], [0, 0, 1, 1], [], []>} : vector<8x2048xbf16>, vector<2048x32xbf16>, vector<8x32xf32> -> vector<8x32xf32>
    %c0_40 = arith.constant 0 : index
    %c1 = arith.constant 1 : index
    %c0_41 = arith.constant 0 : index
    %113 = vector.load %arg7[%c0_40, %c1, %c0_41] : memref<1x8x32xf32, #tpu.memory_space<vmem>>, vector<1x1x32xf32>
    %114 = vector.shape_cast %113 : vector<1x1x32xf32> to vector<1x32xf32>
    %115 = vector.broadcast %114 : vector<1x32xf32> to vector<8x32xf32>
    %116 = arith.addf %112, %115 : vector<8x32xf32>
    %117 = arith.addf %98, %116 : vector<8x32xf32>
    %c0_42 = arith.constant 0 : index
    %c4 = arith.constant 4 : index
    %c0_43 = arith.constant 0 : index
    %118 = vector.load %arg7[%c0_42, %c4, %c0_43] : memref<1x8x32xf32, #tpu.memory_space<vmem>>, vector<1x1x32xf32>
    %119 = vector.shape_cast %118 : vector<1x1x32xf32> to vector<1x32xf32>
    %c0_44 = arith.constant 0 : index
    %c5 = arith.constant 5 : index
    %c0_45 = arith.constant 0 : index
    %120 = vector.load %arg7[%c0_44, %c5, %c0_45] : memref<1x8x32xf32, #tpu.memory_space<vmem>>, vector<1x1x32xf32>
    %121 = vector.shape_cast %120 : vector<1x1x32xf32> to vector<1x32xf32>
    %cst_46 = arith.constant dense<0.000000e+00> : vector<8xf32>
    %122 = vector.multi_reduction <add>, %117, %cst_46 [1] : vector<8x32xf32> to vector<8xf32>
    %123 = vector.shape_cast %122 : vector<8xf32> to vector<8x1xf32>
    %cst_47 = arith.constant 3.200000e+01 : f32
    %124 = vector.broadcast %cst_47 : f32 to vector<8x1xf32>
    %125 = arith.divf %123, %124 : vector<8x1xf32>
    %126 = vector.broadcast %125 : vector<8x1xf32> to vector<8x32xf32>
    %127 = arith.subf %117, %126 : vector<8x32xf32>
    %128 = arith.mulf %127, %127 : vector<8x32xf32>
    %cst_48 = arith.constant dense<0.000000e+00> : vector<8xf32>
    %129 = vector.multi_reduction <add>, %128, %cst_48 [1] : vector<8x32xf32> to vector<8xf32>
    %130 = vector.shape_cast %129 : vector<8xf32> to vector<8x1xf32>
    %cst_49 = arith.constant 3.200000e+01 : f32
    %131 = vector.broadcast %cst_49 : f32 to vector<8x1xf32>
    %132 = arith.divf %130, %131 : vector<8x1xf32>
    %133 = vector.broadcast %125 : vector<8x1xf32> to vector<8x32xf32>
    %134 = arith.subf %117, %133 : vector<8x32xf32>
    %cst_50 = arith.constant 9.99999974E-6 : f32
    %135 = vector.broadcast %cst_50 : f32 to vector<8x1xf32>
    %136 = arith.addf %132, %135 : vector<8x1xf32>
    %137 = math.rsqrt %136 : vector<8x1xf32>
    %138 = vector.broadcast %137 : vector<8x1xf32> to vector<8x32xf32>
    %139 = arith.mulf %134, %138 : vector<8x32xf32>
    %140 = vector.broadcast %119 : vector<1x32xf32> to vector<8x32xf32>
    %141 = arith.mulf %139, %140 : vector<8x32xf32>
    %142 = vector.broadcast %121 : vector<1x32xf32> to vector<8x32xf32>
    %143 = arith.addf %141, %142 : vector<8x32xf32>
    %c0_51 = arith.constant 0 : index
    %c0_52 = arith.constant 0 : index
    %144 = vector.load %arg12[%c0_51, %c0_52] : memref<8x32xf32, #tpu.memory_space<vmem>>, vector<8x32xf32>
    tpu.vector_store %arg12[%c0_51, %c0_52], %143 {strides = array<i32>} : memref<8x32xf32, #tpu.memory_space<vmem>>, vector<8x32xf32>,
    %c1_i32 = arith.constant 1 : i32
    %145 = arith.cmpi eq, %arg0, %c1_i32 : i32
    %146 = arith.extui %145 : i1 to i32
    %c0_i32_53 = arith.constant 0 : i32
    %147 = arith.cmpi ne, %146, %c0_i32_53 : i32
    scf.if %147 {
      %148 = arith.truncf %143 : vector<8x32xf32> to vector<8x32xbf16>
      %c0_54 = arith.constant 0 : index
      %c0_55 = arith.constant 0 : index
      %149 = vector.load %arg9[%c0_54, %c0_55] : memref<32x128xbf16, #tpu.memory_space<vmem>>, vector<32x128xbf16>
      %cst_56 = arith.constant dense<0.000000e+00> : vector<8x128xf32>
      %150 = tpu.matmul %148, %149, %cst_56 {dimension_numbers = #tpu.dot_dimension_numbers<[1], [0], [0], [1], [0, 0, 1, 1], [], []>} : vector<8x32xbf16>, vector<32x128xbf16>, vector<8x128xf32> -> vector<8x128xf32>
      %c0_57 = arith.constant 0 : index
      %c0_58 = arith.constant 0 : index
      %151 = vector.load %arg10[%c0_57, %c0_58] : memref<1x128xf32, #tpu.memory_space<vmem>>, vector<1x128xf32>
      %152 = vector.broadcast %151 : vector<1x128xf32> to vector<8x128xf32>
      %153 = arith.addf %150, %152 : vector<8x128xf32>
      %c0_59 = arith.constant 0 : index
      %c0_60 = arith.constant 0 : index
      %154 = vector.load %arg11[%c0_59, %c0_60] : memref<8x128xf32, #tpu.memory_space<vmem>>, vector<8x128xf32>
      tpu.vector_store %arg11[%c0_59, %c0_60], %153 {strides = array<i32>} : memref<8x128xf32, #tpu.memory_space<vmem>>, vector<8x128xf32>,
    } else {
    }
    return
  }
  func.func @transform_0(%arg0: i32) -> (i32, i32) {
    %c0_i32 = arith.constant 0 : i32
    %c0_i32_0 = arith.constant 0 : i32
    %c0_i32_1 = arith.constant 0 : i32
    return %c0_i32, %c0_i32_0 : i32, i32
  }
  func.func @transform_1(%arg0: i32) -> (i32, i32, i32) {
    %c0_i32 = arith.constant 0 : i32
    %c0_i32_0 = arith.constant 0 : i32
    %c0_i32_1 = arith.constant 0 : i32
    return %arg0, %c0_i32, %c0_i32_0 : i32, i32, i32
  }
  func.func @transform_2(%arg0: i32) -> (i32, i32, i32) {
    %c0_i32 = arith.constant 0 : i32
    %c0_i32_0 = arith.constant 0 : i32
    %c0_i32_1 = arith.constant 0 : i32
    return %arg0, %c0_i32, %c0_i32_0 : i32, i32, i32
  }
  func.func @transform_3(%arg0: i32) -> (i32, i32, i32) {
    %c0_i32 = arith.constant 0 : i32
    %c0_i32_0 = arith.constant 0 : i32
    %c0_i32_1 = arith.constant 0 : i32
    return %arg0, %c0_i32, %c0_i32_0 : i32, i32, i32
  }
  func.func @transform_4(%arg0: i32) -> (i32, i32, i32) {
    %c0_i32 = arith.constant 0 : i32
    %c0_i32_0 = arith.constant 0 : i32
    %c0_i32_1 = arith.constant 0 : i32
    return %arg0, %c0_i32, %c0_i32_0 : i32, i32, i32
  }
  func.func @transform_5(%arg0: i32) -> (i32, i32, i32) {
    %c0_i32 = arith.constant 0 : i32
    %c0_i32_0 = arith.constant 0 : i32
    %c0_i32_1 = arith.constant 0 : i32
    return %arg0, %c0_i32, %c0_i32_0 : i32, i32, i32
  }
  func.func @transform_6(%arg0: i32) -> (i32, i32, i32) {
    %c0_i32 = arith.constant 0 : i32
    %c0_i32_0 = arith.constant 0 : i32
    %c0_i32_1 = arith.constant 0 : i32
    return %arg0, %c0_i32, %c0_i32_0 : i32, i32, i32
  }
  func.func @transform_7(%arg0: i32) -> (i32, i32, i32) {
    %c0_i32 = arith.constant 0 : i32
    %c0_i32_0 = arith.constant 0 : i32
    %c0_i32_1 = arith.constant 0 : i32
    return %arg0, %c0_i32, %c0_i32_0 : i32, i32, i32
  }
  func.func @transform_8(%arg0: i32) -> (i32, i32) {
    %c0_i32 = arith.constant 0 : i32
    %c0_i32_0 = arith.constant 0 : i32
    %c0_i32_1 = arith.constant 0 : i32
    return %c0_i32, %c0_i32_0 : i32, i32
  }
  func.func @transform_9(%arg0: i32) -> (i32, i32) {
    %c0_i32 = arith.constant 0 : i32
    %c0_i32_0 = arith.constant 0 : i32
    %c0_i32_1 = arith.constant 0 : i32
    return %c0_i32, %c0_i32_0 : i32, i32
  }
  func.func @transform_10(%arg0: i32) -> (i32, i32) {
    %c0_i32 = arith.constant 0 : i32
    %c0_i32_0 = arith.constant 0 : i32
    %c0_i32_1 = arith.constant 0 : i32
    return %c0_i32, %c0_i32_0 : i32, i32
  }
}

</mosaic_0001>

<bundles_post_ra>
// kernel: custom_transformer_forward.1
= control target key start
LH: loop header
LB: loop body
LE: loop exit
PB: predicated region body
PF: predicated region fallthrough
CT: control target
= control target key end

     0   :  { %s4526_s0 = inlined_call_operand.vmem [shape: f32[8,32], index: 0, kind: input, shape index: {}]   ;;  %s4527_s1 = inlined_call_operand.vmem [shape: bf16[2,32,96], index: 1, kind: input, shape index: {}]   ;;  %s4528_s2 = inlined_call_operand.vmem [shape: bf16[2,32,32], index: 2, kind: input, shape index: {}]   ;;  %s4529_s3 = inlined_call_operand.vmem [shape: bf16[2,32,2048], index: 3, kind: input, shape index: {}]   ;;  %s4530_s4 = inlined_call_operand.vmem [shape: bf16[2,2048,32], index: 4, kind: input, shape index: {}]   ;;  %s4531_s5 = inlined_call_operand.vmem [shape: f32[2,1,96], index: 5, kind: input, shape index: {}]   ;;  %s4532_s6 = inlined_call_operand.vmem [shape: f32[2,8,32], index: 6, kind: input, shape index: {}]   ;;  %s4533_s7 = inlined_call_operand.vmem [shape: f32[2,1,2048], index: 7, kind: input, shape index: {}]   ;;  %s4534_s8 = inlined_call_operand.vmem [shape: bf16[32,128], index: 8, kind: input, shape index: {}]   ;;  %s4535_s9 = inlined_call_operand.vmem [shape: f32[1,128], index: 9, kind: input, shape index: {}]   ;;  %s4536_s10 = inlined_call_operand.hbm [shape: f32[8,128], index: 10, kind: output, shape index: {}]  }
   0x1   :  { %4537 = sst [smem:[#allocation6_spill]] %s4527_s1 }
   0x2   :  { %4538 = sst [smem:[#allocation7_spill]] %s4528_s2 }
   0x3   :  { %15 = vsyncpa [#allocation4], 0  ;;  %s4072_s13 = smov 0  }
   0x4 LB: > { %s4078_s14 = sadd.s32 4294967295, %s4001_s13   ;;  %p3298_p0 = scmp.ge.s32.totalorder %s4001_s13, 1  ;;  %s4001_s13 = sphi %s4072_s13, %s21_s13  }
   0x5   : > { %p364_p1 = scmp.lt.s32.totalorder %s4001_s13, 3 }
   0x7   : > { %p365_p2 = pnand %p3298_p0, %p364_p1 }
   0x8   : > { %p423_p3 = scmp.lt.s32.totalorder (!%p365_p2), %s4078_s14, 1  ;;  %s4539_s1 = sld [smem:[#allocation6_spill]] (!%p365_p2) }
   0x9   : > { %368 = sbr.rel (%p365_p2) target bundleno = 2838 (0xb16), region = 60  ;;  %s4540_s2 = sld [smem:[#allocation7_spill]] (!%p365_p2) }
   0xa   : > { %p3309_p4 = scmp.ne.s32.totalorder (!%p365_p2), %s4078_s14, 0 }
   0xe   : > { %s4084_s15 = scalar_select %p423_p3, %s4078_s14, 1 }
  0x10   : > { %s3508_s16 = sshll.u32 %s4084_s15, 4  ;;  %s3510_s17 = sshll.u32 %s4084_s15, 8 }
  0x11   : > { %s427_s20 = scalar_lea.vmem %s4539_s1, %s3508_s16  ;;  %s4094_s23 = scalar_lea.vmem %s4540_s2, %s3508_s16 }
  0x12   : > { %s4099_s26 = scalar_lea.vmem %s4529_s3, %s3510_s17  ;;  %s3511_s27 = sshll.u32 %s4084_s15, 10 }
  0x13   : > { %s4105_s30 = scalar_lea.vmem %s4530_s4, %s3511_s27  ;;  %s445_s18 = scalar_lea.vmem %s4531_s5, %s4084_s15 }
  0x14   : > { %s3307_s19 = sshll.u32 %s4084_s15, 3  ;;  %s4115_s22 = scalar_lea.vmem %s4533_s7, %s3508_s16 }
  0x15   : > { %s4120_s17 = scalar_lea.vmem %s4532_s6, %s3307_s19  ;;  %458 = sbr.rel (%p3309_p4) target bundleno = 28 (0x1c), region = 64 }
  0x1a   : > { %v459_v0 = vld [vmem:[%s4526_s0] sm:$0xff]  ;;  %vm460_vm0 = vcmask 261120  }
  0x1b   : > { %461 = vst.msk [vmem:[#allocation2] sm:$0xff] %vm460_vm0, %v459_v0 }
  0x1c PF: > { %v3813_v1 = vld [vmem:[%s427_s20 + $0x8] sm:$0xff]   ;;  %v4003_v2 = vmov 0.0   ;;  %v3814_v3 = vld [vmem:[%s427_s20] sm:$0xff]   ;;  %vm4004_vm1 = vmmov 0   ;;  %vm487_vm2 = vcmask 261120   ;;  %s4005_s1 = smov 104  }
  0x1d   : > { %3713 = vmatprep.subr.bf16.mxu0 %v4003_v2  ;;  %3721 = vmatprep.subr.bf16.mxu1 %v4003_v2  ;;  %v3310_v6 = vld [vmem:[%s445_s18] ss:$0 sm:$0xff]  ;;  %s4006_s2 = smov 120   ;;  %s4007_s15 = smov 112   ;;  %vm548_vm3 = vcmask 64512   ;;  %vm795_vm4 = vcmask 1043456  }
  0x1e   : > { %3714 = vmatpush3.bf16.msra.mxu0 %v3813_v1  ;;  %3717 = vmatprep.mubr.msk.bf16.mxu0 %vm4004_vm1, %v4003_v2  ;;  %s4008_s16 = smov 96   ;;  %s4009_s20 = smov 64   ;;  %vm996_vm5 = vcmask 130048   ;;  %vm998_vm6 = vcmask 195584  }
  0x1f   : > { %3715 = vmatprep.subr.bf16.mxu0 %v4003_v2  ;;  %3723 = vmatprep.mubr.msk.bf16.mxu1 %vm4004_vm1, %v4003_v2  ;;  %s4010_s28 = smov 8   ;;  %s4011_s29 = smov 16  }
  0x20   : > { %s4012_s11 = smov 24   ;;  %p3499_p5 = scmp.ne.s32.totalorder %s4078_s14, 1 }
  0x22   : > { %v4130_v4 = vld [vmem:[#allocation2] sm:$0xff]  ;;  %3716 = vmatpush3.bf16.msra.mxu0 %v3814_v3 }
  0x23   : > { %v463_v5 = vpack.c.bf16 %v4130_v4, %v4130_v4  ;;  %3727 = vmatprep.subr.bf16.mxu0 %v4003_v2 }
  0x25   : > { %3718 = vmatmul.mubr.msk.bf16.vlgmr.msra.gmra.mxu0 %vm487_vm2, %v463_v5 }
  0x26   : > { %3729 = vmatprep.mubr.msk.bf16.mxu0 %vm4004_vm1, %v4003_v2 }
  0xe5   : > { %v525_v7 = vpop.f32.mrf.mxu0 }
  0xe6   : > { %v526_v8 = vadd.f32 %v3310_v6, %v525_v7 }
  0xe7   : > { %v3719_v9 = vpop.f32.mrf.mxu0 }
  0xe8   : > { %538 = vrot.lane.b32.xlu1 %v526_v8, %s4005_s1  ;;  %532 = vrot.lane.b32.xlu0 %v526_v8, %s4006_s2  ;;  %v4141_v11 = vpack.c.bf16 %v526_v8, %v526_v8 }
  0xe9   : > { %v528_v10 = vpop.f32.mrf.mxu0 }
  0xeb   : > { %v3720_v12 = vpop.f32.mrf.mxu0 }
  0xec   : > { %535 = vrot.lane.b32.xlu0 %v526_v8, %s4007_s15  ;;  %546 = vrot.lane.b32.xlu1 %v4141_v11, %s4008_s16 }
 0x15a   : > { %v539_v13 = vpop.permute.xlu1 %538  ;;  %v533_v14 = vpop.permute.xlu0 %532 }
 0x15b   : > { %v542_v15 = vpack.c.bf16 %v533_v14, %v533_v14  ;;  %v4144_v18 = vpack.c.bf16 %v539_v13, %v539_v13 }
 0x15d   : > { %596 = vrot.lane.b32.xlu0 %v542_v15, %s4008_s16 }
 0x15e   : > { %v536_v16 = vpop.permute.xlu0 %535  ;;  %v547_v17 = vpop.permute.xlu1 %546 }
 0x15f   : > { %v4146_v19 = vpack.c.bf16 %v536_v16, %v536_v16  ;;  %v553_v20 = vsel %vm548_vm3, %v547_v17, 0 }
 0x160   : > { %3722 = vmatpush3.bf16.xpose.msra.mxu1 %v553_v20 }
 0x161   : > { %694 = vrot.lane.b32.xlu0 %v4144_v18, %s4008_s16  ;;  %645 = vrot.lane.b32.xlu1 %v4146_v19, %s4008_s16 }
 0x162   : > { %3733 = vmatprep.subr.bf16.mxu1 %v4003_v2 }
 0x167   : > { %3724 = vmatmul.mubr.msk.bf16.vlgmr.msra.gmra.mxu1 %vm548_vm3, %v4141_v11 }
 0x168   : > { %3735 = vmatprep.mubr.msk.bf16.mxu1 %vm4004_vm1, %v4003_v2 }
 0x1cf   : > { %v597_v21 = vpop.permute.xlu0 %596 }
 0x1d0   : > { %v602_v22 = vsel %vm548_vm3, %v597_v21, 0 }
 0x1d1   : > { %3728 = vmatpush3.bf16.xpose.msra.mxu0 %v602_v22 }
 0x1d2   : > { %3739 = vmatprep.subr.bf16.mxu0 %v4003_v2 }
 0x1d3   : > { %v646_v23 = vpop.permute.xlu1 %645  ;;  %v695_v25 = vpop.permute.xlu0 %694 }
 0x1d4   : > { %v651_v24 = vsel %vm548_vm3, %v646_v23, 0  ;;  %v700_v26 = vsel %vm548_vm3, %v695_v25, 0 }
 0x1d5   : > { %3734 = vmatpush3.bf16.xpose.msra.mxu1 %v651_v24 }
 0x1d6   : > { %3745 = vmatprep.subr.bf16.mxu1 %v4003_v2 }
 0x1d8   : > { %3730 = vmatmul.mubr.msk.bf16.vlgmr.msra.gmra.mxu0 %vm548_vm3, %v542_v15 }
 0x1d9   : > { %3740 = vmatpush3.bf16.xpose.msra.mxu0 %v700_v26  ;;  %3741 = vmatprep.mubr.msk.bf16.mxu0 %vm4004_vm1, %v4003_v2 }
 0x1da   : > { %3751 = vmatprep.subr.bf16.mxu0 %v4003_v2 }
 0x1dc   : > { %3736 = vmatmul.mubr.msk.bf16.vlgmr.msra.gmra.mxu1 %vm548_vm3, %v4146_v19 }
 0x1dd   : > { %3747 = vmatprep.mubr.msk.bf16.mxu1 %vm4004_vm1, %v4003_v2 }
 0x1e0   : > { %3742 = vmatmul.mubr.msk.bf16.vlgmr.msra.gmra.mxu0 %vm548_vm3, %v4144_v18 }
 0x1e1   : > { %3753 = vmatprep.mubr.msk.bf16.mxu0 %vm4004_vm1, %v4003_v2 }
 0x227   : > { %v589_v27 = vpop.f32.mrf.mxu1 }
 0x228   : > { %v742_v28 = vsel %vm548_vm3, %v589_v27, -inf }
 0x229   : > { %743 = vmax.xlane.f32.xlu1 %v742_v28  ;;  %v3725_v29 = vpop.f32.mrf.mxu1 }
 0x22b   : > { %v592_v30 = vpop.f32.mrf.mxu1 }
 0x22d   : > { %v3726_v31 = vpop.f32.mrf.mxu1 }
 0x298   : > { %v638_v32 = vpop.f32.mrf.mxu0 }
 0x299   : > { %v745_v33 = vsel %vm548_vm3, %v638_v32, -inf }
 0x29a   : > { %746 = vmax.xlane.f32.xlu0 %v745_v33  ;;  %v3731_v34 = vpop.f32.mrf.mxu0  ;;  %v3815_v33 = vld [vmem:[%s4094_s23 + $0x8] sm:$0xff]  }
 0x29b   : > { %v3816_v34 = vld [vmem:[%s4094_s23] sm:$0xff]  }
 0x29c   : > { %v641_v35 = vpop.f32.mrf.mxu0  ;;  %v687_v36 = vpop.f32.mrf.mxu1 }
 0x29d   : > { %v748_v37 = vsel %vm548_vm3, %v687_v36, -inf }
 0x29e   : > { %v3737_v38 = vpop.f32.mrf.mxu1  ;;  %749 = vmax.xlane.f32.xlu0 %v748_v37  ;;  %v3732_v39 = vpop.f32.mrf.mxu0 }
 0x2a0   : > { %v690_v40 = vpop.f32.mrf.mxu1  ;;  %v736_v41 = vpop.f32.mrf.mxu0 }
 0x2a1   : > { %v751_v42 = vsel %vm548_vm3, %v736_v41, -inf }
 0x2a2   : > { %v3738_v43 = vpop.f32.mrf.mxu1  ;;  %752 = vmax.xlane.f32.xlu1 %v751_v42  ;;  %v3743_v44 = vpop.f32.mrf.mxu0 }
 0x2a4   : > { %v739_v45 = vpop.f32.mrf.mxu0 }
 0x2a6   : > { %v3744_v46 = vpop.f32.mrf.mxu0 }
 0x2b2   : > { %v744_v47 = vpop.xlane.xlu1 %743 }
 0x2b3   : > { %839 = vrot.lane.b32.xlu1 %v542_v15, %s4009_s20  ;;  %v754_v48 = vsub.f32 %v589_v27, %v744_v47 }
 0x2b4   : > { %790 = vrot.lane.b32.xlu0 %v4141_v11, %s4009_s20 }
 0x2b5   : > { %v758_v49 = vmul.f32 1.442695, %v754_v48 }
 0x2b7   : > { %3945 = vpow2.f32 %v758_v49 }
 0x2c4   : > { %v3946_v50 = vpop.eup %3945 }
 0x2c5   : > { %v766_v51 = vsel %vm548_vm3, %v3946_v50, 0.0 }
 0x2d3   : > { %767 = vadd.xlane.f32.xlu0 %v766_v51 }
 0x323   : > { %v747_v52 = vpop.xlane.xlu0 %746 }
 0x324   : > { %v755_v53 = vsub.f32 %v638_v32, %v747_v52 }
 0x326   : > { %v760_v54 = vmul.f32 1.442695, %v755_v53  ;;  %v3322_v53 = vld [vmem:[%s4120_s17] ss:$0 sm:$0xff] }
 0x327   : > { %v750_v55 = vpop.xlane.xlu0 %749 }
 0x328   : > { %3947 = vpow2.f32 %v760_v54  ;;  %v756_v56 = vsub.f32 %v687_v36, %v750_v55 }
 0x32a   : > { %v762_v57 = vmul.f32 1.442695, %v756_v56 }
 0x32b   : > { %v791_v58 = vpop.permute.xlu0 %790  ;;  %v753_v59 = vpop.xlane.xlu1 %752 }
 0x32c   : > { %3949 = vpow2.f32 %v762_v57  ;;  %v797_v60 = vsel %vm795_vm4, %v791_v58, 0  ;;  %v757_v61 = vsub.f32 %v736_v41, %v753_v59 }
 0x32d   : > { %3746 = vmatpush3.bf16.msra.mxu1 %v797_v60 }
 0x32e   : > { %v764_v62 = vmul.f32 1.442695, %v757_v61  ;;  %3757 = vmatprep.subr.bf16.mxu1 %v4003_v2 }
 0x32f   : > { %v840_v63 = vpop.permute.xlu1 %839 }
 0x330   : > { %3951 = vpow2.f32 %v764_v62  ;;  %v845_v0 = vsel %vm795_vm4, %v840_v63, 0 }
 0x331   : > { %3752 = vmatpush3.bf16.msra.mxu0 %v845_v0 }
 0x332   : > { %3763 = vmatprep.subr.bf16.mxu0 %v4003_v2 }
 0x335   : > { %v3948_v1 = vpop.eup %3947 }
 0x336   : > { %v769_v3 = vsel %vm548_vm3, %v3948_v1, 0.0 }
 0x337   : > { %770 = vadd.xlane.f32.xlu1 %v769_v3  ;;  %v1109_v3 = vld [vmem:[%s4099_s26 + $0x80] sm:$0xff] }
 0x339   : > { %v3950_v5 = vpop.eup %3949 }
 0x33a   : > { %v772_v6 = vsel %vm548_vm3, %v3950_v5, 0.0 }
 0x33b   : > { %773 = vadd.xlane.f32.xlu0 %v772_v6  ;;  %v1110_v6 = vld [vmem:[%s4099_s26 + $0x88] sm:$0xff] }
 0x33d   : > { %v3952_v7 = vpop.eup %3951 }
 0x33e   : > { %v775_v8 = vsel %vm548_vm3, %v3952_v7, 0.0 }
 0x33f   : > { %776 = vadd.xlane.f32.xlu1 %v775_v8 }
 0x350   : > { %887 = vrot.lane.b32.xlu1 %v4146_v19, %s4009_s20 }
 0x351   : > { %935 = vrot.lane.b32.xlu0 %v4144_v18, %s4009_s20 }
 0x35c   : > { %v768_v9 = vpop.xlane.xlu0 %767 }
 0x35d   : > { %3953 = vrcp.f32 %v768_v9 }
 0x36a   : > { %v3954_v10 = vpop.eup %3953 }
 0x36b   : > { %v782_v11 = vmul.f32 %v3954_v10, %v3946_v50 }
 0x36d   : > { %v786_v12 = vpack.c.bf16 %v782_v11, %v782_v11  ;;  %v1093_v11 = vld [vmem:[%s4099_s26] sm:$0xff] }
 0x36f   : > { %3748 = vmatmul.mubr.msk.bf16.vlgmr.msra.gmra.mxu1 %vm548_vm3, %v786_v12  ;;  %v1101_v12 = vld [vmem:[%s4099_s26 + $0x40] sm:$0xff] }
 0x370   : > { %3759 = vmatprep.mubr.msk.bf16.mxu1 %vm4004_vm1, %v4003_v2 }
 0x3c0   : > { %v771_v13 = vpop.xlane.xlu1 %770 }
 0x3c1   : > { %3955 = vrcp.f32 %v771_v13  ;;  %v1094_v13 = vld [vmem:[%s4099_s26 + $0x8] sm:$0xff] }
 0x3c4   : > { %v774_v14 = vpop.xlane.xlu0 %773 }
 0x3c5   : > { %3957 = vrcp.f32 %v774_v14  ;;  %v3329_v14 = vcombine.high %v1093_v11, %v1101_v12 }
 0x3c8   : > { %v777_v15 = vpop.xlane.xlu1 %776  ;;  %v936_v20 = vpop.permute.xlu0 %935 }
 0x3c9   : > { %3959 = vrcp.f32 %v777_v15  ;;  %v941_v23 = vsel %vm795_vm4, %v936_v20, 0  ;;  %v1102_v15 = vld [vmem:[%s4099_s26 + $0x48] sm:$0xff]  ;;  %v1119_v20 = vld [vmem:[%s4099_s26 + $0xd0] sm:$0xff] }
 0x3cc   : > { %v888_v16 = vpop.permute.xlu1 %887 }
 0x3cd   : > { %v893_v17 = vsel %vm795_vm4, %v888_v16, 0  ;;  %v3328_v16 = vcombine.low %v1093_v11, %v1101_v12 }
 0x3ce   : > { %v3956_v18 = vpop.eup %3955  ;;  %3758 = vmatpush3.bf16.msra.mxu1 %v893_v17  ;;  %v3330_v17 = vcombine.low %v1094_v13, %v1102_v15 }
 0x3cf   : > { %v783_v19 = vmul.f32 %v3956_v18, %v3948_v1  ;;  %3769 = vmatprep.subr.bf16.mxu1 %v4003_v2  ;;  %v3331_v18 = vcombine.high %v1094_v13, %v1102_v15  ;;  %v3818_v15 = vld [vmem:[%s4105_s30 + $0xf8] sm:$0xff]  }
 0x3d1   : > { %v787_v21 = vpack.c.bf16 %v783_v19, %v783_v19  ;;  %v1111_v19 = vld [vmem:[%s4099_s26 + $0x90] sm:$0xff] }
 0x3d2   : > { %v3958_v22 = vpop.eup %3957 }
 0x3d3   : > { %3754 = vmatmul.mubr.msk.bf16.vlgmr.msra.gmra.mxu0 %vm548_vm3, %v787_v21  ;;  %v784_v24 = vmul.f32 %v3958_v22, %v3950_v5  ;;  %v1117_v5 = vld [vmem:[%s4099_s26 + $0xc0] sm:$0xff]  ;;  %v1112_v21 = vld [vmem:[%s4099_s26 + $0x98] sm:$0xff]  ;;  %v4013_v22 = vmov 0  }
 0x3d4   : > { %3764 = vmatpush3.bf16.msra.mxu0 %v941_v23  ;;  %3765 = vmatprep.mubr.msk.bf16.mxu0 %vm4004_vm1, %v4003_v2  ;;  %v3344_v8 = vcombine.low %v1109_v3, %v1117_v5  ;;  %v3349_v23 = vcombine.high %v1111_v19, %v1119_v20 }
 0x3d5   : > { %v788_v25 = vpack.c.bf16 %v784_v24, %v784_v24  ;;  %v1120_v24 = vld [vmem:[%s4099_s26 + $0xd8] sm:$0xff] }
 0x3d6   : > { %v3960_v26 = vpop.eup %3959 }
 0x3d7   : > { %3760 = vmatmul.mubr.msk.bf16.vlgmr.msra.gmra.mxu1 %vm548_vm3, %v788_v25  ;;  %v785_v27 = vmul.f32 %v3960_v26, %v3952_v7  ;;  %v1118_v7 = vld [vmem:[%s4099_s26 + $0xc8] sm:$0xff]  ;;  %v3348_v25 = vcombine.low %v1111_v19, %v1119_v20  ;;  %v3350_v26 = vcombine.low %v1112_v21, %v1120_v24  ;;  %v3822_v19 = vld [vmem:[%s4105_s30 + $0xf0] sm:$0xff]  }
 0x3d8   : > { %3773 = vmatprep.mubr.msk.bf16.mxu1 %vm4004_vm1, %v4003_v2  ;;  %3770 = vmatpush3.bf16.msra.mxu1 %v3815_v33  ;;  %v3346_v9 = vcombine.low %v1110_v6, %v1118_v7  ;;  %v3347_v10 = vcombine.high %v1110_v6, %v1118_v7  ;;  %v1107_v6 = vld [vmem:[%s4099_s26 + $0x70] sm:$0xff]  ;;  %v1108_v7 = vld [vmem:[%s4099_s26 + $0x78] sm:$0xff] }
 0x3d9   : > { %v789_v28 = vpack.c.bf16 %v785_v27, %v785_v27  ;;  %3771 = vmatprep.subr.bf16.mxu1 %v4003_v2  ;;  %v3351_v27 = vcombine.high %v1112_v21, %v1120_v24  ;;  %v3823_v20 = vld [vmem:[%s4105_s30 + $0x30] sm:$0xff]   ;;  %v3827_v24 = vld [vmem:[%s4105_s30 + $0x28] sm:$0xff]  }
 0x3da   : > { %v3824_v21 = vld [vmem:[%s4105_s30 + $0xb0] sm:$0xff]  }
 0x3db   : > { %3766 = vmatmul.mubr.msk.bf16.vlgmr.msra.gmra.mxu0 %vm548_vm3, %v789_v28 }
 0x3dc   : > { %3772 = vmatpush3.bf16.msra.mxu1 %v3816_v34  ;;  %1404 = vmatprep.mubr.bf16.mxu0 %v4013_v22  ;;  %v3327_v34 = vld [vmem:[%s4120_s17 + $0x3] ss:$0 sm:$0xff] }
 0x3dd   : > { %1425 = vmatprep.subr.bf16.mxu1 %v3347_v10 }
 0x42f   : > { %v833_v29 = vpop.f32.mrf.mxu1 }
 0x431   : > { %v3749_v30 = vpop.f32.mrf.mxu1 }
 0x433   : > { %v836_v31 = vpop.f32.mrf.mxu1 }
 0x435   : > { %v3750_v32 = vpop.f32.mrf.mxu1 }
 0x436   : > { %v3326_v32 = vld [vmem:[%s4120_s17 + $0x2] ss:$0 sm:$0xff] }
 0x493   : > { %v881_v35 = vpop.f32.mrf.mxu0 }
 0x494   : > { %984 = vrot.lane.b32.xlu1 %v881_v35, %s4010_s28 }
 0x495   : > { %v3755_v36 = vpop.f32.mrf.mxu0 }
 0x496   : > { %v1095_v36 = vld [vmem:[%s4099_s26 + $0x10] sm:$0xff] }
 0x497   : > { %v884_v37 = vpop.f32.mrf.mxu0  ;;  %v929_v38 = vpop.f32.mrf.mxu1 }
 0x498   : > { %988 = vrot.lane.b32.xlu0 %v929_v38, %s4011_s29  ;;  %v1103_v37 = vld [vmem:[%s4099_s26 + $0x50] sm:$0xff]  ;;  %v1096_v38 = vld [vmem:[%s4099_s26 + $0x18] sm:$0xff] }
 0x499   : > { %v3756_v39 = vpop.f32.mrf.mxu0  ;;  %v3761_v40 = vpop.f32.mrf.mxu1 }
 0x49a   : > { %v1104_v39 = vld [vmem:[%s4099_s26 + $0x58] sm:$0xff] }
 0x49b   : > { %v932_v41 = vpop.f32.mrf.mxu1  ;;  %v977_v42 = vpop.f32.mrf.mxu0 }
 0x49c   : > { %992 = vrot.lane.b32.xlu1 %v977_v42, %s4012_s11  ;;  %v3333_v42 = vcombine.high %v1095_v36, %v1103_v37 }
 0x49d   : > { %v3762_v43 = vpop.f32.mrf.mxu1  ;;  %v3767_v44 = vpop.f32.mrf.mxu0 }
 0x49e   : > { %v3335_v43 = vcombine.high %v1096_v38, %v1104_v39  ;;  %v1113_v44 = vld [vmem:[%s4099_s26 + $0xa0] sm:$0xff] }
 0x49f   : > { %v980_v2 = vpop.f32.mrf.mxu0 }
 0x4a0   : > { %v1121_v2 = vld [vmem:[%s4099_s26 + $0xe0] sm:$0xff] }
 0x4a1   : > { %v3768_v45 = vpop.f32.mrf.mxu0 }
 0x4a2   : > { %v1114_v45 = vld [vmem:[%s4099_s26 + $0xa8] sm:$0xff] }
 0x506   : > { %v985_v46 = vpop.permute.xlu1 %984 }
 0x507   : > { %v995_v48 = vsel %vm548_vm3, %v833_v29, %v985_v46  ;;  %v1122_v46 = vld [vmem:[%s4099_s26 + $0xe8] sm:$0xff] }
 0x50a   : > { %v989_v47 = vpop.permute.xlu0 %988 }
 0x50b   : > { %v997_v49 = vsel %vm996_vm5, %v995_v48, %v989_v47  ;;  %v3332_v47 = vcombine.low %v1095_v36, %v1103_v37  ;;  %v3334_v48 = vcombine.low %v1096_v38, %v1104_v39  ;;  %v3839_v36 = vld [vmem:[%s4105_s30 + $0x10] sm:$0xff]   ;;  %v3841_v38 = vld [vmem:[%s4105_s30 + $0x48] sm:$0xff]  }
 0x50c   : > { %v3840_v37 = vld [vmem:[%s4105_s30 + $0x90] sm:$0xff]   ;;  %v3842_v39 = vld [vmem:[%s4105_s30 + $0xc8] sm:$0xff]  }
 0x50e   : > { %v993_v50 = vpop.permute.xlu1 %992 }
 0x50f   : > { %v999_v51 = vsel %vm998_vm6, %v997_v49, %v993_v50  ;;  %v3353_v49 = vcombine.high %v1113_v44, %v1121_v2  ;;  %v3355_v50 = vcombine.high %v1114_v45, %v1122_v46 }
 0x510   : > { %v1000_v52 = vpack.c.bf16 %v999_v51, %v999_v51  ;;  %v1097_v51 = vld [vmem:[%s4099_s26 + $0x20] sm:$0xff] }
 0x512   : > { %3774 = vmatmul.mubr.msk.bf16.vlgmr.msra.gmra.mxu1 %vm487_vm2, %v1000_v52  ;;  %v1105_v52 = vld [vmem:[%s4099_s26 + $0x60] sm:$0xff] }
 0x513   : > { %1426 = vmatpush1.bf16.msra.mxu1 %v3346_v9  ;;  %1445 = vmatprep.mubr.bf16.mxu1 %v4013_v22 }
 0x514   : > { %1427 = vmatprep.subr.bf16.mxu1 %v3331_v18  ;;  %v3821_v18 = vld [vmem:[%s4105_s30 + $0x70] sm:$0xff]  }
 0x517   : > { %1428 = vmatpush1.bf16.msra.mxu1 %v3330_v17  ;;  %v3820_v17 = vld [vmem:[%s4105_s30 + $0xb8] sm:$0xff]  }
 0x518   : > { %1507 = vmatprep.subr.bf16.mxu1 %v3351_v27  ;;  %v3830_v27 = vld [vmem:[%s4105_s30 + $0xe0] sm:$0xff]  }
 0x5d2   : > { %v1059_v54 = vpop.f32.mrf.mxu1 }
 0x5d3   : > { %v1060_v55 = vadd.f32 %v3322_v53, %v1059_v54  ;;  %v1098_v53 = vld [vmem:[%s4099_s26 + $0x28] sm:$0xff] }
 0x5d4   : > { %v3775_v56 = vpop.f32.mrf.mxu1  ;;  %v1106_v54 = vld [vmem:[%s4099_s26 + $0x68] sm:$0xff] }
 0x5d5   : > { %v1065_v57 = vadd.f32 %v1060_v55, %v4130_v4  ;;  %v3345_v4 = vcombine.high %v1109_v3, %v1117_v5  ;;  %v3352_v55 = vcombine.low %v1113_v44, %v1121_v2  ;;  %v3354_v56 = vcombine.low %v1114_v45, %v1122_v46  ;;  %v1099_v5 = vld [vmem:[%s4099_s26 + $0x30] sm:$0xff]  ;;  %v3846_v44 = vld [vmem:[%s4105_s30 + $0xc0] sm:$0xff]   ;;  %v3849_v46 = vld [vmem:[%s4105_s30 + $0x178] sm:$0xff]  }
 0x5d6   : > { %v1062_v58 = vpop.f32.mrf.mxu1  ;;  %v3341_v10 = vcombine.high %v1099_v5, %v1107_v6  ;;  %v3340_v12 = vcombine.low %v1099_v5, %v1107_v6  ;;  %v3847_v2 = vld [vmem:[%s4105_s30] sm:$0xff]  }
 0x5d7   : > { %v1068_v59 = vsel %vm487_vm2, %v1065_v57, 0.0  ;;  %1384 = vmatprep.subr.bf16.mxu0 %v3345_v4  ;;  %v3339_v58 = vcombine.high %v1098_v53, %v1106_v54  ;;  %v1100_v4 = vld [vmem:[%s4099_s26 + $0x38] sm:$0xff]  ;;  %v3848_v45 = vld [vmem:[%s4105_s30 + $0x80] sm:$0xff]  }
 0x5d8   : > { %1069 = vadd.xlane.f32.xlu0 %v1068_v59  ;;  %v3776_v60 = vpop.f32.mrf.mxu1  ;;  %1385 = vmatpush1.bf16.msra.mxu0 %v3344_v8  ;;  %v1115_v59 = vld [vmem:[%s4099_s26 + $0xb0] sm:$0xff]  ;;  %v3343_v11 = vcombine.high %v1100_v4, %v1108_v7  ;;  %v3342_v13 = vcombine.low %v1100_v4, %v1108_v7 }
 0x5d9   : > { %1386 = vmatprep.subr.bf16.mxu0 %v3329_v14  ;;  %v1123_v60 = vld [vmem:[%s4099_s26 + $0xf0] sm:$0xff]  ;;  %v3817_v14 = vld [vmem:[%s4105_s30 + $0x78] sm:$0xff]  }
 0x5da   : > { %v3356_v8 = vcombine.low %v1115_v59, %v1123_v60 }
 0x5dc   : > { %1387 = vmatpush1.bf16.msra.mxu0 %v3328_v16  ;;  %v3819_v16 = vld [vmem:[%s4105_s30 + $0x38] sm:$0xff]  }
 0x5dd   : > { %1466 = vmatprep.subr.bf16.mxu0 %v3349_v23  ;;  %v3826_v23 = vld [vmem:[%s4105_s30 + $0xe8] sm:$0xff]  }
 0x661   : > { %v1070_v61 = vpop.xlane.xlu0 %1069 }
 0x662   : > { %v1072_v62 = vmul.f32 0.03125, %v1070_v61  ;;  %v1116_v61 = vld [vmem:[%s4099_s26 + $0xb8] sm:$0xff] }
 0x664   : > { %v1073_v63 = vsub.f32 %v1065_v57, %v1072_v62  ;;  %v3337_v57 = vcombine.high %v1097_v51, %v1105_v52  ;;  %v1124_v62 = vld [vmem:[%s4099_s26 + $0xf8] sm:$0xff] }
 0x665   : > { %v3359_v3 = vcombine.high %v1116_v61, %v1124_v62  ;;  %v3358_v9 = vcombine.low %v1116_v61, %v1124_v62 }
 0x666   : > { %v1074_v0 = vmul.f32 %v1073_v63, %v1073_v63 }
 0x668   : > { %v1075_v1 = vsel %vm487_vm2, %v1074_v0, 0.0  ;;  %v3338_v0 = vcombine.low %v1098_v53, %v1106_v54 }
 0x669   : > { %1076 = vadd.xlane.f32.xlu1 %v1075_v1  ;;  %v3357_v1 = vcombine.high %v1115_v59, %v1123_v60 }
 0x6f2   : > { %v1077_v28 = vpop.xlane.xlu1 %1076 }
 0x6f3   : > { %v1078_v29 = vmul.f32 0.03125, %v1077_v28  ;;  %v3831_v28 = vld [vmem:[%s4105_s30 + $0x20] sm:$0xff]  }
 0x6f5   : > { %v1079_v30 = vadd.f32 1e-05, %v1078_v29  ;;  %v3832_v29 = vld [vmem:[%s4105_s30 + $0xa0] sm:$0xff]  }
 0x6f7   : > { %3961 = vrsqrt.f32 %v1079_v30  ;;  %v3833_v30 = vld [vmem:[%s4105_s30 + $0x58] sm:$0xff]  }
 0x704   : > { %v3962_v31 = vpop.eup %3961 }
 0x705   : > { %v1081_v33 = vmul.f32 %v3962_v31, %v1073_v63  ;;  %v3336_v63 = vcombine.low %v1097_v51, %v1105_v52  ;;  %v3834_v31 = vld [vmem:[%s4105_s30 + $0xd8] sm:$0xff]   ;;  %v4316_v51 = vld [vmem:[%s4115_s22 + $0x8] sm:$0xff] }
 0x707   : > { %v1086_v35 = vmul.f32 %v3326_v32, %v1081_v33  ;;  %v3835_v32 = vld [vmem:[%s4105_s30 + $0x18] sm:$0xff]  }
 0x708   : > { %v3836_v33 = vld [vmem:[%s4105_s30 + $0x98] sm:$0xff]  }
 0x709   : > { %v4234_v40 = vadd.f32 %v3327_v34, %v1086_v35  ;;  %v3837_v34 = vld [vmem:[%s4105_s30 + $0x50] sm:$0xff]  }
 0x70a   : > { %v3838_v35 = vld [vmem:[%s4105_s30 + $0xd0] sm:$0xff]  }
 0x70b   : > { %v4238_v41 = vpack.c.bf16 %v4234_v40, %v4234_v40 }
 0x70d   : > { %3360 = vmatmul.mubr.msk.bf16.vlgmr.msra.gmra.mxu0 %vm487_vm2, %v4238_v41  ;;  %3361 = vmatmul.mubr.msk.bf16.vlgmr.msra.gmra.mxu1 %vm487_vm2, %v4238_v41 }
 0x70e   : > { %1467 = vmatpush1.bf16.msra.mxu0 %v3348_v25  ;;  %1508 = vmatpush1.bf16.msra.mxu1 %v3350_v26  ;;  %v3828_v25 = vld [vmem:[%s4105_s30 + $0xa8] sm:$0xff]   ;;  %v3829_v26 = vld [vmem:[%s4105_s30 + $0x60] sm:$0xff]  }
 0x70f   : > { %1468 = vmatprep.subr.bf16.mxu0 %v3333_v42  ;;  %1509 = vmatprep.subr.bf16.mxu1 %v3335_v43  ;;  %v3844_v42 = vld [vmem:[%s4105_s30 + $0x88] sm:$0xff]   ;;  %v3845_v43 = vld [vmem:[%s4105_s30 + $0x40] sm:$0xff]  }
 0x710   : > { %1486 = vmatprep.mubr.bf16.mxu0 %v4013_v22  ;;  %1527 = vmatprep.mubr.bf16.mxu1 %v4013_v22 }
 0x712   : > { %1469 = vmatpush1.bf16.msra.mxu0 %v3332_v47  ;;  %1510 = vmatpush1.bf16.msra.mxu1 %v3334_v48  ;;  %v3850_v47 = vld [vmem:[%s4105_s30 + $0x1f8] sm:$0xff]   ;;  %v1129_v48 = vlaneseq }
 0x713   : > { %1548 = vmatprep.subr.bf16.mxu0 %v3353_v49  ;;  %1589 = vmatprep.subr.bf16.mxu1 %v3355_v50 }
 0x714   : > { %v4312_v49 = vshrl.u32 %v1129_v48, 7 }
 0x715   : > { %3362 = vmatmul.mubr.msk.bf16.vlgmr.msra.gmra.mxu0 %vm487_vm2, %v4238_v41  ;;  %3363 = vmatmul.mubr.msk.bf16.vlgmr.msra.gmra.mxu1 %vm487_vm2, %v4238_v41 }
 0x716   : > { %1549 = vmatpush1.bf16.msra.mxu0 %v3352_v55  ;;  %1590 = vmatpush1.bf16.msra.mxu1 %v3354_v56  ;;  %v1155_v50 = vsub.s32 6, %v4312_v49  ;;  %v1131_v53 = vsub.s32 0, %v4312_v49  ;;  %v1139_v54 = vsub.s32 2, %v4312_v49  ;;  %v4326_v55 = vld [vmem:[%s4115_s22] sm:$0xff]  ;;  %v1135_v56 = vsub.s32 1, %v4312_v49 }
 0x717   : > { %1550 = vmatprep.subr.bf16.mxu0 %v3337_v57  ;;  %1591 = vmatprep.subr.bf16.mxu1 %v3339_v58  ;;  %v1143_v57 = vsub.s32 3, %v4312_v49  ;;  %v1151_v7 = vsub.s32 5, %v4312_v49 }
 0x718   : > { %1568 = vmatprep.mubr.bf16.mxu0 %v4013_v22  ;;  %1609 = vmatprep.mubr.bf16.mxu1 %v4013_v22  ;;  %v4321_v52 = vrot.slane %v4316_v51, %v1155_v50  ;;  %v1132_v58 = vrot.slane %v4326_v55, %v1131_v53  ;;  %v1140_v59 = vrot.slane %v4326_v55, %v1139_v54 }
 0x719   : > { %v1136_v60 = vrot.slane %v4326_v55, %v1135_v56  ;;  %v1144_v61 = vrot.slane %v4326_v55, %v1143_v57 }
 0x71a   : > { %1551 = vmatpush1.bf16.msra.mxu0 %v3336_v63  ;;  %1592 = vmatpush1.bf16.msra.mxu1 %v3338_v0 }
 0x71b   : > { %1630 = vmatprep.subr.bf16.mxu0 %v3357_v1  ;;  %1671 = vmatprep.subr.bf16.mxu1 %v3359_v3 }
 0x71d   : > { %3364 = vmatmul.mubr.msk.bf16.vlgmr.msra.gmra.mxu0 %vm487_vm2, %v4238_v41  ;;  %3365 = vmatmul.mubr.msk.bf16.vlgmr.msra.gmra.mxu1 %vm487_vm2, %v4238_v41 }
 0x71e   : > { %1631 = vmatpush1.bf16.msra.mxu0 %v3356_v8  ;;  %1672 = vmatpush1.bf16.msra.mxu1 %v3358_v9  ;;  %v1159_v8 = vsub.s32 7, %v4312_v49 }
 0x71f   : > { %1632 = vmatprep.subr.bf16.mxu0 %v3341_v10  ;;  %1673 = vmatprep.subr.bf16.mxu1 %v3343_v11 }
 0x720   : > { %1650 = vmatprep.mubr.bf16.mxu0 %v4013_v22  ;;  %1691 = vmatprep.mubr.bf16.mxu1 %v4013_v22  ;;  %v3825_v22 = vld [vmem:[%s4105_s30 + $0x68] sm:$0xff]  }
 0x722   : > { %1633 = vmatpush1.bf16.msra.mxu0 %v3340_v12  ;;  %1674 = vmatpush1.bf16.msra.mxu1 %v3342_v13 }
 0x723   : > { %3534 = vmatprep.subr.bf16.mxu0 %v3817_v14  ;;  %3556 = vmatprep.subr.bf16.mxu1 %v3818_v15 }
 0x725   : > { %3366 = vmatmul.mubr.msk.bf16.vlgmr.msra.gmra.mxu0 %vm487_vm2, %v4238_v41  ;;  %3367 = vmatmul.mubr.msk.bf16.vlgmr.msra.gmra.mxu1 %vm487_vm2, %v4238_v41  ;;  %v3843_v41 = vld [vmem:[%s4105_s30 + $0x8] sm:$0xff]  }
 0x726   : > { %3535 = vmatpush3.bf16.msra.mxu0 %v3819_v16  ;;  %3557 = vmatpush3.bf16.msra.mxu1 %v3820_v17 }
 0x727   : > { %3536 = vmatprep.subr.bf16.mxu0 %v3821_v18  ;;  %3558 = vmatprep.subr.bf16.mxu1 %v3822_v19  ;;  %v1152_v19 = vrot.slane %v4326_v55, %v1151_v7 }
 0x72a   : > { %3537 = vmatpush3.bf16.msra.mxu0 %v3823_v20  ;;  %3559 = vmatpush3.bf16.msra.mxu1 %v3824_v21  ;;  %v1160_v20 = vrot.slane %v4326_v55, %v1159_v8  ;;  %v3851_v21 = vld [vmem:[%s4105_s30 + $0x138] sm:$0xff]  }
 0x72b   : > { %3538 = vmatprep.subr.bf16.mxu0 %v3825_v22  ;;  %3560 = vmatprep.subr.bf16.mxu1 %v3826_v23  ;;  %v3852_v22 = vld [vmem:[%s4105_s30 + $0x1b8] sm:$0xff]  }
 0x72e   : > { %3539 = vmatpush3.bf16.msra.mxu0 %v3827_v24  ;;  %3561 = vmatpush3.bf16.msra.mxu1 %v3828_v25 }
 0x72f   : > { %3540 = vmatprep.subr.bf16.mxu0 %v3829_v26  ;;  %3562 = vmatprep.subr.bf16.mxu1 %v3830_v27  ;;  %v3853_v27 = vld [vmem:[%s4105_s30 + $0x170] sm:$0xff]  }
 0x732   : > { %3541 = vmatpush3.bf16.msra.mxu0 %v3831_v28  ;;  %3563 = vmatpush3.bf16.msra.mxu1 %v3832_v29  ;;  %v3854_v28 = vld [vmem:[%s4105_s30 + $0x1f0] sm:$0xff]  }
 0x733   : > { %3542 = vmatprep.subr.bf16.mxu0 %v3833_v30  ;;  %3564 = vmatprep.subr.bf16.mxu1 %v3834_v31 }
 0x736   : > { %3543 = vmatpush3.bf16.msra.mxu0 %v3835_v32  ;;  %3565 = vmatpush3.bf16.msra.mxu1 %v3836_v33  ;;  %v3855_v33 = vld [vmem:[%s4105_s30 + $0x130] sm:$0xff]  }
 0x737   : > { %3544 = vmatprep.subr.bf16.mxu0 %v3837_v34  ;;  %3566 = vmatprep.subr.bf16.mxu1 %v3838_v35  ;;  %v3856_v34 = vld [vmem:[%s4105_s30 + $0x1b0] sm:$0xff]  }
 0x73a   : > { %3545 = vmatpush3.bf16.msra.mxu0 %v3839_v36  ;;  %3567 = vmatpush3.bf16.msra.mxu1 %v3840_v37  ;;  %v3857_v37 = vld [vmem:[%s4105_s30 + $0x168] sm:$0xff]  }
 0x73b   : > { %3546 = vmatprep.subr.bf16.mxu0 %v3841_v38  ;;  %3568 = vmatprep.subr.bf16.mxu1 %v3842_v39  ;;  %v3858_v38 = vld [vmem:[%s4105_s30 + $0x1e8] sm:$0xff]  }
 0x73e   : > { %3547 = vmatpush3.bf16.msra.mxu0 %v3843_v41  ;;  %3569 = vmatpush3.bf16.msra.mxu1 %v3844_v42 }
 0x73f   : > { %3548 = vmatprep.subr.bf16.mxu0 %v3845_v43  ;;  %3570 = vmatprep.subr.bf16.mxu1 %v3846_v44 }
 0x742   : > { %3549 = vmatpush3.bf16.msra.mxu0 %v3847_v2  ;;  %3571 = vmatpush3.bf16.msra.mxu1 %v3848_v45  ;;  %v3859_v45 = vld [vmem:[%s4105_s30 + $0x128] sm:$0xff]  }
 0x743   : > { %3578 = vmatprep.subr.bf16.mxu0 %v3849_v46  ;;  %3600 = vmatprep.subr.bf16.mxu1 %v3850_v47  ;;  %v3860_v46 = vld [vmem:[%s4105_s30 + $0x1a8] sm:$0xff]  }
 0x7cd   : > { %v1406_v62 = vpop.f32.mrf.mxu0  ;;  %v1447_v63 = vpop.f32.mrf.mxu1 }
 0x7ce   : > { %v1407_v0 = vadd.f32 %v1406_v62, %v1132_v58  ;;  %v1448_v1 = vadd.f32 %v1447_v63, %v1140_v59  ;;  %v3861_v58 = vld [vmem:[%s4105_s30 + $0x160] sm:$0xff]   ;;  %v1147_v62 = vsub.s32 4, %v4312_v49 }
 0x7cf   : > { %v1408_v3 = vpop.f32.mrf.mxu0  ;;  %v1449_v5 = vpop.f32.mrf.mxu1  ;;  %v3862_v59 = vld [vmem:[%s4105_s30 + $0x1e0] sm:$0xff]  }
 0x7d0   : > { %v1409_v6 = vadd.f32 %v1408_v3, %v1136_v60  ;;  %v1450_v4 = vadd.f32 %v1449_v5, %v1144_v61  ;;  %v1700_v9 = vmax.f32 %v1407_v0, 0.0  ;;  %v1702_v10 = vmax.f32 %v1448_v1, 0.0  ;;  %v3863_v63 = vld [vmem:[%s4105_s30 + $0x120] sm:$0xff]   ;;  %v3865_v5 = vld [vmem:[%s4105_s30 + $0x158] sm:$0xff]  }
 0x7d1   : > { %v1410_v11 = vpop.f32.mrf.mxu0  ;;  %v1451_v12 = vpop.f32.mrf.mxu1  ;;  %v3864_v0 = vld [vmem:[%s4105_s30 + $0x1a0] sm:$0xff]  }
 0x7d2   : > { %v1701_v13 = vmax.f32 %v1409_v6, 0.0  ;;  %v1703_v14 = vmax.f32 %v1450_v4, 0.0  ;;  %v1716_v23 = vpack.c.bf16 %v1700_v9, %v1700_v9  ;;  %v1718_v24 = vpack.c.bf16 %v1702_v10, %v1702_v10  ;;  %v3866_v6 = vld [vmem:[%s4105_s30 + $0x1d8] sm:$0xff]  }
 0x7d3   : > { %v1411_v15 = vpop.f32.mrf.mxu0  ;;  %v1452_v16 = vpop.f32.mrf.mxu1  ;;  %v1180_v4 = vrot.slane %v4316_v51, %v1147_v62  ;;  %v3867_v11 = vld [vmem:[%s4105_s30 + $0x118] sm:$0xff]  }
 0x7d4   : > { %v1717_v17 = vpack.c.bf16 %v1701_v13, %v1701_v13  ;;  %v1719_v18 = vpack.c.bf16 %v1703_v14, %v1703_v14  ;;  %v3868_v12 = vld [vmem:[%s4105_s30 + $0x198] sm:$0xff]   ;;  %v3869_v15 = vld [vmem:[%s4105_s30 + $0x150] sm:$0xff]  }
 0x7d5   : > { %v4352_v25 = vpop.f32.mrf.mxu0  ;;  %v4354_v26 = vpop.f32.mrf.mxu1  ;;  %v3870_v16 = vld [vmem:[%s4105_s30 + $0x1d0] sm:$0xff]  }
 0x7d6   : > { %2793 = vmatprep.mubr.bf16.mxu0 %v1717_v17  ;;  %2833 = vmatprep.mubr.bf16.mxu1 %v1719_v18 }
 0x7d7   : > { %v1490_v29 = vpop.f32.mrf.mxu0  ;;  %v1531_v30 = vpop.f32.mrf.mxu1  ;;  %2794 = vmatmul.mubr.bf16.vlgmr.msra.gmra.mxu0 %v1716_v23  ;;  %2834 = vmatmul.mubr.bf16.vlgmr.msra.gmra.mxu1 %v1718_v24  ;;  %v1148_v23 = vrot.slane %v4326_v55, %v1147_v62  ;;  %v1156_v24 = vrot.slane %v4326_v55, %v1155_v50  ;;  %v3875_v50 = vld [vmem:[%s4105_s30 + $0x108] sm:$0xff]  }
 0x7d8   : > { %v1491_v31 = vadd.f32 %v1490_v29, %v1152_v19  ;;  %v1532_v32 = vadd.f32 %v1531_v30, %v1160_v20  ;;  %3579 = vmatpush3.bf16.msra.mxu0 %v3851_v21  ;;  %3601 = vmatpush3.bf16.msra.mxu1 %v3852_v22  ;;  %v3871_v21 = vld [vmem:[%s4105_s30 + $0x110] sm:$0xff]   ;;  %v3874_v29 = vld [vmem:[%s4105_s30 + $0x1c8] sm:$0xff]   ;;  %v1168_v30 = vrot.slane %v4316_v51, %v1135_v56  ;;  %v3877_v56 = vld [vmem:[%s4105_s30 + $0x140] sm:$0xff]  }
 0x7d9   : > { %v1492_v35 = vpop.f32.mrf.mxu0  ;;  %v1533_v36 = vpop.f32.mrf.mxu1  ;;  %3580 = vmatprep.subr.bf16.mxu0 %v3853_v27  ;;  %3602 = vmatprep.subr.bf16.mxu1 %v3854_v28  ;;  %v3872_v22 = vld [vmem:[%s4105_s30 + $0x190] sm:$0xff]   ;;  %v3876_v55 = vld [vmem:[%s4105_s30 + $0x188] sm:$0xff]  }
 0x7da   : > { %v1705_v39 = vmax.f32 %v1491_v31, 0.0  ;;  %v1707_v41 = vmax.f32 %v1532_v32, 0.0  ;;  %v1176_v31 = vrot.slane %v4316_v51, %v1143_v57  ;;  %v1530_v35 = vadd.f32 %v4354_v26, %v1156_v24  ;;  %v3878_v36 = vld [vmem:[%s4105_s30 + $0x1c0] sm:$0xff]   ;;  %v3882_v26 = vld [vmem:[%s4105_s30 + $0x2f8] sm:$0xff]   ;;  %v3904_v24 = vld [vmem:[%s4105_s30 + $0x290] sm:$0xff]  }
 0x7db   : > { %v1493_v42 = vpop.f32.mrf.mxu0  ;;  %v1534_v43 = vpop.f32.mrf.mxu1 }
 0x7dc   : > { %v1721_v44 = vpack.c.bf16 %v1705_v39, %v1705_v39  ;;  %v1723_v2 = vpack.c.bf16 %v1707_v41, %v1707_v41  ;;  %3581 = vmatpush3.bf16.msra.mxu0 %v3855_v33  ;;  %3603 = vmatpush3.bf16.msra.mxu1 %v3856_v34  ;;  %v1489_v34 = vadd.f32 %v4352_v25, %v1148_v23  ;;  %v3880_v39 = vld [vmem:[%s4105_s30 + $0x180] sm:$0xff]   ;;  %v1706_v42 = vmax.f32 %v1530_v35, 0.0  ;;  %v3881_v25 = vld [vmem:[%s4105_s30 + $0x278] sm:$0xff]  }
 0x7dd   : > { %v4364_v47 = vpop.f32.mrf.mxu0  ;;  %v4366_v48 = vpop.f32.mrf.mxu1  ;;  %3582 = vmatprep.subr.bf16.mxu0 %v3857_v37  ;;  %3604 = vmatprep.subr.bf16.mxu1 %v3858_v38  ;;  %v3879_v38 = vld [vmem:[%s4105_s30 + $0x100] sm:$0xff]   ;;  %v1164_v23 = vrot.slane %v4316_v51, %v1131_v53  ;;  %v1192_v53 = vrot.slane %v4316_v51, %v1159_v8 }
 0x7de   : > { %2873 = vmatprep.mubr.bf16.mxu0 %v1721_v44  ;;  %2913 = vmatprep.mubr.bf16.mxu1 %v1723_v2  ;;  %v1704_v41 = vmax.f32 %v1489_v34, 0.0  ;;  %v3883_v2 = vld [vmem:[%s4105_s30 + $0x238] sm:$0xff]  }
 0x7df   : > { %v1572_v60 = vpop.f32.mrf.mxu0  ;;  %v1613_v61 = vpop.f32.mrf.mxu1 }
 0x7e0   : > { %3583 = vmatpush3.bf16.msra.mxu0 %v3859_v45  ;;  %3605 = vmatpush3.bf16.msra.mxu1 %v3860_v46  ;;  %v1573_v37 = vadd.f32 %v1572_v60, %v1168_v30  ;;  %v1614_v57 = vadd.f32 %v1613_v61, %v1176_v31  ;;  %v1720_v45 = vpack.c.bf16 %v1704_v41, %v1704_v41  ;;  %v3885_v60 = vld [vmem:[%s4105_s30 + $0x270] sm:$0xff]   ;;  %v3907_v30 = vld [vmem:[%s4105_s30 + $0x208] sm:$0xff]  }
 0x7e1   : > { %v1574_v1 = vpop.f32.mrf.mxu0  ;;  %v1615_v3 = vpop.f32.mrf.mxu1  ;;  %3584 = vmatprep.subr.bf16.mxu0 %v3861_v58  ;;  %3606 = vmatprep.subr.bf16.mxu1 %v3862_v59  ;;  %v1722_v46 = vpack.c.bf16 %v1706_v42, %v1706_v42  ;;  %v3884_v58 = vld [vmem:[%s4105_s30 + $0x2b8] sm:$0xff]   ;;  %v3886_v61 = vld [vmem:[%s4105_s30 + $0x2f0] sm:$0xff]   ;;  %v1571_v31 = vadd.f32 %v4364_v47, %v1164_v23  ;;  %v3912_v47 = vld [vmem:[%s4105_s30 + $0x280] sm:$0xff]  }
 0x7e2   : > { %v1709_v43 = vmax.f32 %v1573_v37, 0.0  ;;  %v1711_v44 = vmax.f32 %v1614_v57, 0.0  ;;  %v3889_v1 = vld [vmem:[%s4105_s30 + $0x268] sm:$0xff]   ;;  %v3917_v57 = vld [vmem:[%s4105_s30 + $0x370] sm:$0xff]  }
 0x7e3   : > { %v1575_v9 = vpop.f32.mrf.mxu0  ;;  %v1616_v10 = vpop.f32.mrf.mxu1  ;;  %v3890_v3 = vld [vmem:[%s4105_s30 + $0x2e8] sm:$0xff]   ;;  %v1708_v8 = vmax.f32 %v1571_v31, 0.0  ;;  %v3919_v42 = vld [vmem:[%s4105_s30 + $0x330] sm:$0xff]  }
 0x7e4   : > { %3585 = vmatpush3.bf16.msra.mxu0 %v3863_v63  ;;  %3607 = vmatpush3.bf16.msra.mxu1 %v3864_v0  ;;  %v1725_v59 = vpack.c.bf16 %v1709_v43, %v1709_v43  ;;  %v1727_v62 = vpack.c.bf16 %v1711_v44, %v1711_v44  ;;  %v3887_v63 = vld [vmem:[%s4105_s30 + $0x230] sm:$0xff]   ;;  %v3894_v9 = vld [vmem:[%s4105_s30 + $0x2e0] sm:$0xff]   ;;  %v3922_v43 = vld [vmem:[%s4105_s30 + $0x3e8] sm:$0xff]  }
 0x7e5   : > { %v1652_v13 = vpop.f32.mrf.mxu0  ;;  %v1693_v14 = vpop.f32.mrf.mxu1  ;;  %3586 = vmatprep.subr.bf16.mxu0 %v3865_v5  ;;  %3608 = vmatprep.subr.bf16.mxu1 %v3866_v6  ;;  %v3888_v0 = vld [vmem:[%s4105_s30 + $0x2b0] sm:$0xff]   ;;  %v3891_v5 = vld [vmem:[%s4105_s30 + $0x228] sm:$0xff]   ;;  %v3895_v10 = vld [vmem:[%s4105_s30 + $0x220] sm:$0xff]  }
 0x7e6   : > { %v4380_v17 = vadd.f32 %v1652_v13, %v1180_v4  ;;  %v4383_v18 = vadd.f32 %v1693_v14, %v4321_v52  ;;  %v3873_v52 = vld [vmem:[%s4105_s30 + $0x148] sm:$0xff]   ;;  %v3893_v4 = vld [vmem:[%s4105_s30 + $0x260] sm:$0xff]   ;;  %v3898_v13 = vld [vmem:[%s4105_s30 + $0x2d8] sm:$0xff]  }
 0x7e7   : > { %v4385_v19 = vpop.f32.mrf.mxu0  ;;  %v4387_v20 = vpop.f32.mrf.mxu1  ;;  %v3892_v6 = vld [vmem:[%s4105_s30 + $0x2a8] sm:$0xff]   ;;  %v3899_v14 = vld [vmem:[%s4105_s30 + $0x218] sm:$0xff]  }
 0x7e8   : > { %3587 = vmatpush3.bf16.msra.mxu0 %v3867_v11  ;;  %3609 = vmatpush3.bf16.msra.mxu1 %v3868_v12  ;;  %v3896_v11 = vld [vmem:[%s4105_s30 + $0x2a0] sm:$0xff]   ;;  %v3897_v12 = vld [vmem:[%s4105_s30 + $0x258] sm:$0xff]   ;;  %v3923_v44 = vld [vmem:[%s4105_s30 + $0x328] sm:$0xff]  }
 0x7e9   : > { %v1656_v27 = vpop.f32.mrf.mxu0  ;;  %v1697_v28 = vpop.f32.mrf.mxu1  ;;  %3588 = vmatprep.subr.bf16.mxu0 %v3869_v15  ;;  %3610 = vmatprep.subr.bf16.mxu1 %v3870_v16  ;;  %v3900_v15 = vld [vmem:[%s4105_s30 + $0x298] sm:$0xff]   ;;  %v3901_v16 = vld [vmem:[%s4105_s30 + $0x250] sm:$0xff]  }
 0x7ea   : > { %v3905_v27 = vld [vmem:[%s4105_s30 + $0x248] sm:$0xff]   ;;  %v1172_v28 = vrot.slane %v4316_v51, %v1139_v54 }
 0x7eb   : > { %v1657_v32 = vpop.f32.mrf.mxu0  ;;  %v1698_v33 = vpop.f32.mrf.mxu1  ;;  %v3908_v54 = vld [vmem:[%s4105_s30 + $0x288] sm:$0xff]  }
 0x7ec   : > { %3589 = vmatpush3.bf16.msra.mxu0 %v3871_v21  ;;  %3611 = vmatpush3.bf16.msra.mxu1 %v3872_v22  ;;  %v3902_v21 = vld [vmem:[%s4105_s30 + $0x2d0] sm:$0xff]   ;;  %v3909_v32 = vld [vmem:[%s4105_s30 + $0x240] sm:$0xff]   ;;  %v1612_v33 = vadd.f32 %v4366_v48, %v1172_v28  ;;  %v3914_v48 = vld [vmem:[%s4105_s30 + $0x3f8] sm:$0xff]  }
 0x7ed   : > { %3590 = vmatprep.subr.bf16.mxu0 %v3873_v52  ;;  %3612 = vmatprep.subr.bf16.mxu1 %v3874_v29  ;;  %v3903_v22 = vld [vmem:[%s4105_s30 + $0x210] sm:$0xff]   ;;  %v3906_v52 = vld [vmem:[%s4105_s30 + $0x2c8] sm:$0xff]   ;;  %v1184_v29 = vrot.slane %v4316_v51, %v1151_v7  ;;  %v1696_v51 = vadd.f32 %v4387_v20, %v1192_v53  ;;  %v3911_v7 = vld [vmem:[%s4105_s30 + $0x200] sm:$0xff]  }
 0x7ee   : > { %v1710_v34 = vmax.f32 %v1612_v33, 0.0  ;;  %v3916_v20 = vld [vmem:[%s4105_s30 + $0x3b8] sm:$0xff]  }
 0x7ef   : > { %v1655_v49 = vadd.f32 %v4385_v19, %v1184_v29  ;;  %v3915_v19 = vld [vmem:[%s4105_s30 + $0x338] sm:$0xff]  }
 0x7f0   : > { %3591 = vmatpush3.bf16.msra.mxu0 %v3875_v50  ;;  %3613 = vmatpush3.bf16.msra.mxu1 %v3876_v55  ;;  %v3910_v50 = vld [vmem:[%s4105_s30 + $0x2c0] sm:$0xff]   ;;  %v3913_v55 = vld [vmem:[%s4105_s30 + $0x378] sm:$0xff]   ;;  %v1726_v37 = vpack.c.bf16 %v1710_v34, %v1710_v34 }
 0x7f1   : > { %3592 = vmatprep.subr.bf16.mxu0 %v3877_v56  ;;  %3614 = vmatprep.subr.bf16.mxu1 %v3878_v36  ;;  %v1713_v35 = vmax.f32 %v1655_v49, 0.0  ;;  %v1715_v56 = vmax.f32 %v1696_v51, 0.0  ;;  %v1724_v36 = vpack.c.bf16 %v1708_v8, %v1708_v8 }
 0x7f3   : > { %v1731_v41 = vpack.c.bf16 %v1715_v56, %v1715_v56 }
 0x7f4   : > { %3593 = vmatpush3.bf16.msra.mxu0 %v3879_v38  ;;  %3615 = vmatpush3.bf16.msra.mxu1 %v3880_v39  ;;  %v1729_v38 = vpack.c.bf16 %v1713_v35, %v1713_v35  ;;  %v3918_v39 = vld [vmem:[%s4105_s30 + $0x3f0] sm:$0xff]  }
 0x7f5   : > { %3622 = vmatprep.subr.bf16.mxu0 %v3881_v25  ;;  %3644 = vmatprep.subr.bf16.mxu1 %v3882_v26  ;;  %v3920_v25 = vld [vmem:[%s4105_s30 + $0x3b0] sm:$0xff]   ;;  %v3921_v26 = vld [vmem:[%s4105_s30 + $0x368] sm:$0xff]  }
 0x7f7   : > { %2874 = vmatmul.mubr.bf16.vlgmr.msra.gmra.mxu0 %v1720_v45  ;;  %2914 = vmatmul.mubr.bf16.vlgmr.msra.gmra.mxu1 %v1722_v46  ;;  %v3925_v45 = vld [vmem:[%s4105_s30 + $0x360] sm:$0xff]  }
 0x7f8   : > { %3623 = vmatpush3.bf16.msra.mxu0 %v3883_v2  ;;  %2953 = vmatprep.mubr.bf16.mxu0 %v1725_v59  ;;  %v3924_v2 = vld [vmem:[%s4105_s30 + $0x3a8] sm:$0xff]   ;;  %v3926_v46 = vld [vmem:[%s4105_s30 + $0x3e0] sm:$0xff]  }
 0x7f9   : > { %3645 = vmatpush3.bf16.msra.mxu1 %v3884_v58  ;;  %2993 = vmatprep.mubr.bf16.mxu1 %v1727_v62  ;;  %v3927_v58 = vld [vmem:[%s4105_s30 + $0x320] sm:$0xff]   ;;  %v3931_v62 = vld [vmem:[%s4105_s30 + $0x318] sm:$0xff]  }
 0x7fa   : > { %3624 = vmatprep.subr.bf16.mxu0 %v3885_v60  ;;  %3646 = vmatprep.subr.bf16.mxu1 %v3886_v61  ;;  %v3928_v59 = vld [vmem:[%s4105_s30 + $0x3a0] sm:$0xff]   ;;  %v3929_v60 = vld [vmem:[%s4105_s30 + $0x358] sm:$0xff]  }
 0x7fb   : > { %v3930_v61 = vld [vmem:[%s4105_s30 + $0x3d8] sm:$0xff]  }
 0x7fc   : > { %3625 = vmatpush3.bf16.msra.mxu0 %v3887_v63  ;;  %v3932_v63 = vld [vmem:[%s4105_s30 + $0x398] sm:$0xff]  }
 0x7fd   : > { %3647 = vmatpush3.bf16.msra.mxu1 %v3888_v0  ;;  %3626 = vmatprep.subr.bf16.mxu0 %v3889_v1  ;;  %v3933_v0 = vld [vmem:[%s4105_s30 + $0x350] sm:$0xff]  }
 0x7fe   : > { %3648 = vmatprep.subr.bf16.mxu1 %v3890_v3  ;;  %v3934_v1 = vld [vmem:[%s4105_s30 + $0x3d0] sm:$0xff]  }
 0x7ff   : > { %v3935_v3 = vld [vmem:[%s4105_s30 + $0x310] sm:$0xff]  }
 0x800   : > { %3627 = vmatpush3.bf16.msra.mxu0 %v3891_v5  ;;  %v3936_v5 = vld [vmem:[%s4105_s30 + $0x390] sm:$0xff]  }
 0x801   : > { %3649 = vmatpush3.bf16.msra.mxu1 %v3892_v6  ;;  %3628 = vmatprep.subr.bf16.mxu0 %v3893_v4  ;;  %v3937_v6 = vld [vmem:[%s4105_s30 + $0x348] sm:$0xff]  }
 0x802   : > { %3650 = vmatprep.subr.bf16.mxu1 %v3894_v9  ;;  %v3938_v4 = vld [vmem:[%s4105_s30 + $0x3c8] sm:$0xff]  }
 0x803   : > { %v3939_v9 = vld [vmem:[%s4105_s30 + $0x308] sm:$0xff]  }
 0x804   : > { %3629 = vmatpush3.bf16.msra.mxu0 %v3895_v10  ;;  %v3940_v10 = vld [vmem:[%s4105_s30 + $0x388] sm:$0xff]  }
 0x805   : > { %3651 = vmatpush3.bf16.msra.mxu1 %v3896_v11  ;;  %3630 = vmatprep.subr.bf16.mxu0 %v3897_v12  ;;  %v3941_v11 = vld [vmem:[%s4105_s30 + $0x340] sm:$0xff]  }
 0x806   : > { %3652 = vmatprep.subr.bf16.mxu1 %v3898_v13  ;;  %v3942_v12 = vld [vmem:[%s4105_s30 + $0x3c0] sm:$0xff]  }
 0x807   : > { %v3943_v13 = vld [vmem:[%s4105_s30 + $0x300] sm:$0xff]  }
 0x808   : > { %3631 = vmatpush3.bf16.msra.mxu0 %v3899_v14  ;;  %v1712_v14 = vmax.f32 %v4380_v17, 0.0 }
 0x809   : > { %3653 = vmatpush3.bf16.msra.mxu1 %v3900_v15  ;;  %3632 = vmatprep.subr.bf16.mxu0 %v3901_v16  ;;  %v3944_v15 = vld [vmem:[%s4105_s30 + $0x380] sm:$0xff]   ;;  %v1714_v16 = vmax.f32 %v4383_v18, 0.0 }
 0x80a   : > { %3654 = vmatprep.subr.bf16.mxu1 %v3902_v21  ;;  %v1728_v21 = vpack.c.bf16 %v1712_v14, %v1712_v14 }
 0x80c   : > { %3633 = vmatpush3.bf16.msra.mxu0 %v3903_v22  ;;  %v1730_v22 = vpack.c.bf16 %v1714_v16, %v1714_v16  ;;  %v3497_v16 = vld [vmem:[%s4120_s17 + $0x4] ss:$0 sm:$0xff] }
 0x80d   : > { %3655 = vmatpush3.bf16.msra.mxu1 %v3904_v24  ;;  %3634 = vmatprep.subr.bf16.mxu0 %v3905_v27  ;;  %v3368_v27 = vld [vmem:[%s4120_s17 + $0x1] ss:$0 sm:$0xff] }
 0x80e   : > { %3656 = vmatprep.subr.bf16.mxu1 %v3906_v52 }
 0x810   : > { %3635 = vmatpush3.bf16.msra.mxu0 %v3907_v30 }
 0x811   : > { %3657 = vmatpush3.bf16.msra.mxu1 %v3908_v54  ;;  %3636 = vmatprep.subr.bf16.mxu0 %v3909_v32 }
 0x812   : > { %3658 = vmatprep.subr.bf16.mxu1 %v3910_v50 }
 0x814   : > { %3637 = vmatpush3.bf16.msra.mxu0 %v3911_v7 }
 0x815   : > { %3659 = vmatpush3.bf16.msra.mxu1 %v3912_v47  ;;  %3666 = vmatprep.subr.bf16.mxu0 %v3913_v55 }
 0x816   : > { %3688 = vmatprep.subr.bf16.mxu1 %v3914_v48 }
 0x817   : > { %2954 = vmatmul.mubr.bf16.vlgmr.msra.gmra.mxu0 %v1724_v36 }
 0x818   : > { %2994 = vmatmul.mubr.bf16.vlgmr.msra.gmra.mxu1 %v1726_v37  ;;  %3667 = vmatpush3.bf16.msra.mxu0 %v3915_v19 }
 0x819   : > { %3033 = vmatprep.mubr.bf16.mxu0 %v1729_v38  ;;  %3689 = vmatpush3.bf16.msra.mxu1 %v3916_v20 }
 0x81a   : > { %3073 = vmatprep.mubr.bf16.mxu1 %v1731_v41  ;;  %3668 = vmatprep.subr.bf16.mxu0 %v3917_v57 }
 0x81b   : > { %3690 = vmatprep.subr.bf16.mxu1 %v3918_v39 }
 0x81c   : > { %3669 = vmatpush3.bf16.msra.mxu0 %v3919_v42 }
 0x81d   : > { %3691 = vmatpush3.bf16.msra.mxu1 %v3920_v25  ;;  %3670 = vmatprep.subr.bf16.mxu0 %v3921_v26 }
 0x81e   : > { %3692 = vmatprep.subr.bf16.mxu1 %v3922_v43 }
 0x820   : > { %3671 = vmatpush3.bf16.msra.mxu0 %v3923_v44 }
 0x821   : > { %3693 = vmatpush3.bf16.msra.mxu1 %v3924_v2  ;;  %3672 = vmatprep.subr.bf16.mxu0 %v3925_v45 }
 0x822   : > { %3694 = vmatprep.subr.bf16.mxu1 %v3926_v46 }
 0x824   : > { %3673 = vmatpush3.bf16.msra.mxu0 %v3927_v58 }
 0x825   : > { %3695 = vmatpush3.bf16.msra.mxu1 %v3928_v59  ;;  %3674 = vmatprep.subr.bf16.mxu0 %v3929_v60 }
 0x826   : > { %3696 = vmatprep.subr.bf16.mxu1 %v3930_v61 }
 0x828   : > { %3675 = vmatpush3.bf16.msra.mxu0 %v3931_v62 }
 0x829   : > { %3697 = vmatpush3.bf16.msra.mxu1 %v3932_v63  ;;  %3676 = vmatprep.subr.bf16.mxu0 %v3933_v0 }
 0x82a   : > { %3698 = vmatprep.subr.bf16.mxu1 %v3934_v1 }
 0x82c   : > { %3677 = vmatpush3.bf16.msra.mxu0 %v3935_v3 }
 0x82d   : > { %3699 = vmatpush3.bf16.msra.mxu1 %v3936_v5  ;;  %3678 = vmatprep.subr.bf16.mxu0 %v3937_v6 }
 0x82e   : > { %3700 = vmatprep.subr.bf16.mxu1 %v3938_v4 }
 0x830   : > { %3679 = vmatpush3.bf16.msra.mxu0 %v3939_v9 }
 0x831   : > { %3701 = vmatpush3.bf16.msra.mxu1 %v3940_v10  ;;  %3680 = vmatprep.subr.bf16.mxu0 %v3941_v11 }
 0x832   : > { %3702 = vmatprep.subr.bf16.mxu1 %v3942_v12 }
 0x834   : > { %3681 = vmatpush3.bf16.msra.mxu0 %v3943_v13 }
 0x835   : > { %3703 = vmatpush3.bf16.msra.mxu1 %v3944_v15 }
 0x837   : > { %3034 = vmatmul.mubr.bf16.vlgmr.msra.gmra.mxu0 %v1728_v21 }
 0x838   : > { %3074 = vmatmul.mubr.bf16.vlgmr.msra.gmra.mxu1 %v1730_v22  ;;  %v3498_v22 = vld [vmem:[%s4120_s17 + $0x5] ss:$0 sm:$0xff] }
 0x897   : > { %v3550_v23 = vpop.f32.mrf.mxu0  ;;  %v3572_v24 = vpop.f32.mrf.mxu1 }
 0x899   : > { %v3551_v28 = vpop.f32.mrf.mxu0  ;;  %v3573_v52 = vpop.f32.mrf.mxu1 }
 0x89a   : > { %v3552_v29 = vadd.f32 %v3551_v28, %v3550_v23  ;;  %v3574_v53 = vadd.f32 %v3573_v52, %v3572_v24 }
 0x89b   : > { %v3553_v17 = vpop.f32.mrf.mxu0  ;;  %v3575_v30 = vpop.f32.mrf.mxu1 }
 0x89c   : > { %v2796_v31 = vadd.f32 %v3552_v29, %v3368_v27 }
 0x89d   : > { %v3554_v54 = vpop.f32.mrf.mxu0  ;;  %v3576_v32 = vpop.f32.mrf.mxu1 }
 0x89e   : > { %v2836_v18 = vadd.f32 %v3574_v53, %v2796_v31 }
 0x8b7   : > { %v3594_v33 = vpop.f32.mrf.mxu0  ;;  %v3616_v50 = vpop.f32.mrf.mxu1 }
 0x8b9   : > { %v3595_v49 = vpop.f32.mrf.mxu0  ;;  %v3617_v51 = vpop.f32.mrf.mxu1 }
 0x8ba   : > { %v3596_v57 = vadd.f32 %v3595_v49, %v3594_v33  ;;  %v3618_v39 = vadd.f32 %v3617_v51, %v3616_v50 }
 0x8bb   : > { %v3597_v7 = vpop.f32.mrf.mxu0  ;;  %v3619_v8 = vpop.f32.mrf.mxu1 }
 0x8bc   : > { %v2876_v38 = vadd.f32 %v3596_v57, %v2836_v18 }
 0x8bd   : > { %v3598_v47 = vpop.f32.mrf.mxu0  ;;  %v3620_v55 = vpop.f32.mrf.mxu1 }
 0x8be   : > { %v2916_v42 = vadd.f32 %v3618_v39, %v2876_v38 }
 0x8d7   : > { %v3638_v34 = vpop.f32.mrf.mxu0 }
 0x8d8   : > { %v3660_v48 = vpop.f32.mrf.mxu1 }
 0x8d9   : > { %v3639_v35 = vpop.f32.mrf.mxu0 }
 0x8da   : > { %v3661_v56 = vpop.f32.mrf.mxu1  ;;  %v3640_v41 = vadd.f32 %v3639_v35, %v3638_v34 }
 0x8db   : > { %v3641_v19 = vpop.f32.mrf.mxu0  ;;  %v3662_v43 = vadd.f32 %v3661_v56, %v3660_v48 }
 0x8dc   : > { %v3663_v36 = vpop.f32.mrf.mxu1  ;;  %v2956_v25 = vadd.f32 %v3640_v41, %v2916_v42 }
 0x8dd   : > { %v3642_v20 = vpop.f32.mrf.mxu0 }
 0x8de   : > { %v3664_v37 = vpop.f32.mrf.mxu1  ;;  %v2996_v45 = vadd.f32 %v3662_v43, %v2956_v25 }
 0x8f7   : > { %v3682_v26 = vpop.f32.mrf.mxu0 }
 0x8f8   : > { %v3704_v44 = vpop.f32.mrf.mxu1 }
 0x8f9   : > { %v3683_v2 = vpop.f32.mrf.mxu0 }
 0x8fa   : > { %v3684_v46 = vadd.f32 %v3683_v2, %v3682_v26  ;;  %v3705_v58 = vpop.f32.mrf.mxu1 }
 0x8fb   : > { %v3685_v59 = vpop.f32.mrf.mxu0  ;;  %v3706_v61 = vadd.f32 %v3705_v58, %v3704_v44 }
 0x8fc   : > { %v3036_v60 = vadd.f32 %v3684_v46, %v2996_v45  ;;  %v3707_v62 = vpop.f32.mrf.mxu1 }
 0x8fd   : > { %v3686_v63 = vpop.f32.mrf.mxu0 }
 0x8fe   : > { %v3076_v0 = vadd.f32 %v3706_v61, %v3036_v60  ;;  %v3708_v1 = vpop.f32.mrf.mxu1 }
 0x900   : > { %v3081_v3 = vadd.f32 %v3076_v0, %v4234_v40 }
 0x902   : > { %v3084_v5 = vsel %vm487_vm2, %v3081_v3, 0.0 }
 0x903   : > { %3085 = vadd.xlane.f32.xlu0 %v3084_v5 }
 0x98c   : > { %v3086_v6 = vpop.xlane.xlu0 %3085 }
 0x98d   : > { %v3087_v4 = vmul.f32 0.03125, %v3086_v6 }
 0x98f   : > { %v3088_v9 = vsub.f32 %v3081_v3, %v3087_v4 }
 0x991   : > { %v3089_v10 = vmul.f32 %v3088_v9, %v3088_v9 }
 0x993   : > { %v3090_v11 = vsel %vm487_vm2, %v3089_v10, 0.0 }
 0x994   : > { %3091 = vadd.xlane.f32.xlu0 %v3090_v11 }
 0xa1d   : > { %v3092_v12 = vpop.xlane.xlu0 %3091 }
 0xa1e   : > { %v3093_v13 = vmul.f32 0.03125, %v3092_v12 }
 0xa20   : > { %v3094_v14 = vadd.f32 1e-05, %v3093_v13 }
 0xa22   : > { %3963 = vrsqrt.f32 %v3094_v14 }
 0xa2f   : > { %v3964_v15 = vpop.eup %3963 }
 0xa30   : > { %v3096_v21 = vmul.f32 %v3964_v15, %v3088_v9 }
 0xa32   : > { %v3101_v40 = vmul.f32 %v3497_v16, %v3096_v21  ;;  %3111 = sbr.rel (%p3499_p5) target bundleno = 2823 (0xb07), region = 68 }
 0xa34   : > { %v3106_v23 = vadd.f32 %v3498_v22, %v3101_v40 }
 0xa36   : > { %3107 = vst.msk [vmem:[#allocation2] sm:$0xff] %vm487_vm2, %v3106_v23 }
 0xa37   : > { %v3965_v24 = vld [vmem:[%s4534_s8 + $0x8] sm:$0xff]   ;;  %v4014_v27 = vmov 0.0   ;;  %v3966_v28 = vld [vmem:[%s4534_s8] sm:$0xff]   ;;  %vm4015_vm7 = vmmov 0   ;;  %v3112_v52 = vpack.c.bf16 %v3106_v23, %v3106_v23 }
 0xa38   : > { %3777 = vmatprep.subr.bf16.mxu0 %v4014_v27  ;;  %3781 = vmatprep.mubr.msk.bf16.mxu0 %vm4015_vm7, %v4014_v27  ;;  %v3500_v29 = vld [vmem:[%s4535_s9] ss:$0 sm:$0xff] }
 0xa39   : > { %3778 = vmatpush3.bf16.msra.mxu0 %v3965_v24 }
 0xa3a   : > { %3779 = vmatprep.subr.bf16.mxu0 %v4014_v27 }
 0xa3d   : > { %3780 = vmatpush3.bf16.msra.mxu0 %v3966_v28 }
 0xa40   : > { %3782 = vmatmul.mubr.msk.bf16.vlgmr.msra.gmra.mxu0 %vm487_vm2, %v3112_v52 }
 0xb00   : > { %v3173_v53 = vpop.f32.mrf.mxu0 }
 0xb01   : > { %v3174_v17 = vadd.f32 %v3500_v29, %v3173_v53 }
 0xb02   : > { %v3783_v30 = vpop.f32.mrf.mxu0 }
 0xb03   : > { %3179 = vst [vmem:[#allocation3] sm:$0xff] %v3174_v17 }
 0xb04   : > { %v3176_v31 = vpop.f32.mrf.mxu0 }
 0xb06   : > { %v3784_v54 = vpop.f32.mrf.mxu0 }
 0xb07 PF: > { %p3789_p6 = scmp.eq.s32.totalorder %s4078_s14, 1  ;;  %s4016_s21 = smov [#allocation3]  }
 0xb08   : > { %s3187_s22 = sshll.u32 %s4016_s21, 4  ;;  %s3188_s22 = int_to_ptr.vmem [resolvable:$true] %s3187_s22 }
 0xb09   : > { %s3967_s24 = scalar_lea.vmem %s3188_s22, 128  ;;  %p3974_p10 = scmp.lt.s32.totalorder %s3188_s22, %s3188_s22 }
 0xb0a   : > { %p3968_p7 = scmp.ne.s32.totalorder %s3188_s22, %s3967_s24  ;;  %p3975_p11 = scmp.lt.s32.totalorder %s3967_s24, %s3967_s24 }
 0xb0c   : > { %p3969_p8 = pnand %p3968_p7, %p3789_p6  ;;  %p3976_p12 = por %p3975_p11, %p3974_p10 }
 0xb0e   : > { %p3970_p9 = pneg %p3969_p8 }
 0xb10   : > { %p3977_p13 = pnand %p3976_p12, %p3970_p9 }
 0xb12   : > { %3980 = shalt.err (!%p3977_p13)
}
 0xb13   : > { %3786 = dma.vmem_to_hbm [thread:$0]  (%p3789_p6), %s3188_s22, 128, %s4536_s10, [#allocation4]  }
 0xb14   : > { %3996 = dma.done.wait (%p3789_p6), [#allocation4], 128  }
 0xb15   : > { %3998 = vsyncadd (%p3789_p6), [#allocation4], 4294967168 }
 0xb16 PF: > { %s21_s13 = sadd.s32 1, %s4001_s13  }
 0xb17   : > { %p18_p0 = scmp.ge.s32.totalorder %s21_s13, 4  }
 0xb19   :  { %20 = sbr.rel (!%p18_p0) target bundleno = 4 (0x4), region = 113 }
 0xb1e   :  { %3200 = vsyncpa [#allocation4], 1 }
 0xb1f   :  { %3202 = vsyncpa [#allocation4 + $0x1], 1 }

</bundles_post_ra>
